<compile_context>
chip_gen: v7x
topology: tpu7x:2x2x1
jax: 0.10.0
libtpu: 0.0.40
codegen_flags: <defaults>
</compile_context>

<pallas_src>
import jax
import jax.numpy as jnp
from jax.experimental import pallas as pl
from jax.experimental.pallas import tpu as pltpu

_LANE = 128


def _vmem_capacity_bytes():
    """Per-TensorCore VMEM capacity, with a conservative (v7x) fallback."""
    try:
        info = pltpu.get_tpu_info()
        for name in ("vmem_capacity_bytes", "vmem_size_bytes", "vmem_bytes"):
            cap = getattr(info, name, None)
            if cap:
                return int(cap)
    except Exception:
        pass
    return 64 * 1024 * 1024  # v7x per-TC VMEM (smallest of v5e/v6e/v7x)


def _lip2d_kernel(x_ref, logit_ref, out_ref):
    # x_ref / logit_ref: (SIR, W, CB, 128) with SIR = 2*OHB + 1 (1-row halo on
    # each side of the strip already materialized).  out_ref: (OHB, OW, CB, 128)
    OHB, OW = out_ref.shape[0], out_ref.shape[1]

    w = jnp.exp(logit_ref[...].astype(jnp.float32))      # weight = logit.exp()
    wx = x_ref[...].astype(jnp.float32) * w               # weighted_x = x * weight

    def max_pool_3x3_s2_p1(v):
        # v: (SIR, W, CB, 128).  Spatial dims are leading (vreg-row) axes, so
        # every step is plain row selection / elementwise max on full (CB,128)
        # tiles -- no lane/sublane shuffles, no padding copies.
        # Rows: output row j pools strip rows {2j, 2j+1, 2j+2}.
        if OHB == 1:
            r0, r1, r2 = v[0:1], v[1:2], v[2:3]
        else:
            vr = v[: 2 * OHB].reshape(OHB, 2, *v.shape[1:])   # free leading split
            r0, r1 = vr[:, 0], vr[:, 1]                        # rows 2j, 2j+1
            r2 = jnp.concatenate([vr[1:, 0], v[2 * OHB:2 * OHB + 1]], axis=0)
        hm = jnp.maximum(jnp.maximum(r0, r1), r2)              # (OHB, W, CB, 128)

        # Columns: output col ow pools cols {2ow-1, 2ow, 2ow+1}; the padded
        # col (-1) is replaced by a duplicate of col 0 (exact for max w/ -inf pad).
        hr = hm.reshape(OHB, OW, 2, *v.shape[2:])              # free leading split
        c0, c1 = hr[:, :, 0], hr[:, :, 1]                      # cols 2ow, 2ow+1
        if OW == 1:
            cl = c0
        else:
            cl = jnp.concatenate([c0[:, :1], c1[:, :OW - 1]], axis=1)
        return jnp.maximum(jnp.maximum(c0, c1), cl)            # (OHB, OW, CB, 128)

    pooled_wx = max_pool_3x3_s2_p1(wx)
    pooled_w = max_pool_3x3_s2_p1(w)
    # Exact division (memory-bound kernel -> full-precision ratio is free).
    out_ref[...] = (pooled_wx / pooled_w).astype(out_ref.dtype)


def lip2d(x, logit, kernel=3, stride=2, padding=1):
    """LIP2D forward. x, logit: (N, C, H, W). Returns (N, C, OH, OW)."""
    assert kernel == 3 and stride == 2 and padding == 1
    N, C, H, W = x.shape
    assert logit.shape == x.shape
    assert H % 2 == 0 and W % 2 == 0
    OH, OW = H // 2, W // 2
    NC = N * C
    CS_total = -(-NC // _LANE)            # channel "sublane" units of 128 lanes

    # ---- generation-aware VMEM budget ---------------------------------------
    vmem_cap = _vmem_capacity_bytes()                          # 64 MiB (v7x) / 128 MiB
    vmem_limit = min((vmem_cap * 3) // 4, 100 * 1024 * 1024)   # scoped limit we request
    budget = (vmem_limit * 85) // 100                          # working-set target

    esize = 4  # f32 compute / IO

    def ws_bytes(cs_blk, ohb):
        sir = 2 * ohb + 1
        in_blk = sir * W * cs_blk * _LANE * esize
        out_blk = ohb * OW * cs_blk * _LANE * esize
        # 2 inputs x double-buffer (4x) + ~3 block-sized f32 intermediates
        # (w, wx, row-pooled) + double-buffered output (2x).
        return 7 * in_blk + 2 * out_blk

    def fits(cs_blk, ohb):
        return ws_bytes(cs_blk, ohb) <= budget

    # ---- tile selection: shrink channel block first, then H strips ----------
    cs_blk, ohb = CS_total, OH
    while not fits(cs_blk, ohb) and cs_blk > 8:
        cs_blk = max(8, ((cs_blk // 2) // 8) * 8)              # multiple of 8 sublanes
    while not fits(cs_blk, ohb) and ohb > 1:
        ohb = (ohb + 1) // 2                                   # halo-aware H strips
    # Keep >= 2 parallel blocks when possible so v7x's 2 TensorCores both work.
    if (-(-CS_total // cs_blk)) * (-(-OH // ohb)) < 2:
        if CS_total >= 16:
            cs_blk = max(8, ((CS_total // 2) // 8) * 8)
        elif OH >= 2:
            ohb = (OH + 1) // 2

    n_cblk = -(-CS_total // cs_blk)
    cs_pad = n_cblk * cs_blk
    n_strips = -(-OH // ohb)
    oh_pad = n_strips * ohb
    sir = 2 * ohb + 1

    # ---- wrapper layout: channels -> lanes, H -> halo'd strips --------------
    def to_strips(a):
        a = a.reshape(NC, H, W).transpose(1, 2, 0)             # (H, W, NC)
        lane_pad = cs_pad * _LANE - NC
        if lane_pad:
            a = jnp.pad(a, ((0, 0), (0, 0), (0, lane_pad)))
        # Padded-H rows: top pad row == replicate row 0 (exact for -inf max pad);
        # extra bottom rows (strip alignment) replicate the last row.
        total_rows = 2 * oh_pad + 1
        parts = [a[:1], a]
        bot_extra = total_rows - (H + 1)
        if bot_extra > 0:
            parts.append(jnp.broadcast_to(a[H - 1:H], (bot_extra,) + a.shape[1:]))
        p = jnp.concatenate(parts, axis=0)                     # (2*oh_pad+1, W, NCp)
        if n_strips == 1:
            s = p[None]
        else:
            row_idx = (2 * ohb) * jnp.arange(n_strips)[:, None] + jnp.arange(sir)[None, :]
            s = p[row_idx]                                     # overlapping 1-row halos
        return s.reshape(n_strips * sir, W, cs_pad, _LANE)

    xs = to_strips(x)
    ls = to_strips(logit)

    out = pl.pallas_call(
        _lip2d_kernel,
        out_shape=jax.ShapeDtypeStruct((oh_pad, OW, cs_pad, _LANE), x.dtype),
        grid=(n_strips, n_cblk),
        in_specs=[
            pl.BlockSpec((sir, W, cs_blk, _LANE), lambda s, c: (s, 0, c, 0)),
            pl.BlockSpec((sir, W, cs_blk, _LANE), lambda s, c: (s, 0, c, 0)),
        ],
        out_specs=pl.BlockSpec((ohb, OW, cs_blk, _LANE), lambda s, c: (s, 0, c, 0)),
        compiler_params=pltpu.CompilerParams(
            dimension_semantics=("parallel", "parallel"),
            vmem_limit_bytes=int(vmem_limit),
        ),
    )(xs, ls)

    # ---- back to NCHW --------------------------------------------------------
    out = out[:OH].reshape(OH, OW, cs_pad * _LANE)[:, :, :NC]  # (OH, OW, NC)
    return out.transpose(2, 0, 1).reshape(N, C, OH, OW)


if __name__ == "__main__":
    key = jax.random.PRNGKey(0)
    k1, k2 = jax.random.split(key)
    N, C, H, W = 2, 4, 16, 16
    x = jax.random.normal(k1, (N, C, H, W), dtype=jnp.float32)
    logit = jax.random.normal(k2, (N, C, H, W), dtype=jnp.float32)

    out = jax.block_until_ready(lip2d(x, logit))

    # Plain-JAX reference (same semantics as F.max_pool2d with -inf padding).
    w = jnp.exp(logit)
    wx = x * w

    def mp(v):
        return jax.lax.reduce_window(
            v, -jnp.inf, jax.lax.max,
            window_dimensions=(1, 1, 3, 3),
            window_strides=(1, 1, 2, 2),
            padding=[(0, 0), (0, 0), (1, 1), (1, 1)],
        )

    ref = mp(wx) / mp(w)
    assert out.shape == ref.shape == (N, C, 8, 8)
    assert bool(jnp.allclose(out, ref, atol=1e-4, rtol=1e-4))
    print("KERNEL_OK")
</pallas_src>

<mosaic_0001>
module attributes {stable_mosaic.version = 11 : i64} {
  func.func @_lip2d_kernel(%arg0: i32, %arg1: i32, %arg2: memref<9x16x1x128xf32, #tpu.memory_space<vmem>>, %arg3: memref<9x16x1x128xf32, #tpu.memory_space<vmem>>, %arg4: memref<4x8x1x128xf32, #tpu.memory_space<vmem>>) attributes {dimension_semantics = [#tpu.dimension_semantics<parallel>, #tpu.dimension_semantics<parallel>], iteration_bounds = array<i64: 2, 1>, scalar_prefetch = 0 : i64, scratch_operands = 0 : i64, tpu.core_type = #tpu.core_type<tc>, window_params = [{transform_indices = @transform_0, window_bounds = array<i64: 9, 16, 1, 128>}, {transform_indices = @transform_1, window_bounds = array<i64: 9, 16, 1, 128>}, {transform_indices = @transform_2, window_bounds = array<i64: 4, 8, 1, 128>}]} {
    %c0 = arith.constant 0 : index
    %c0_0 = arith.constant 0 : index
    %c0_1 = arith.constant 0 : index
    %c0_2 = arith.constant 0 : index
    %0 = vector.load %arg3[%c0, %c0_0, %c0_1, %c0_2] : memref<9x16x1x128xf32, #tpu.memory_space<vmem>>, vector<9x16x1x128xf32>
    %1 = math.exp %0 : vector<9x16x1x128xf32>
    %c0_3 = arith.constant 0 : index
    %c0_4 = arith.constant 0 : index
    %c0_5 = arith.constant 0 : index
    %c0_6 = arith.constant 0 : index
    %2 = vector.load %arg2[%c0_3, %c0_4, %c0_5, %c0_6] : memref<9x16x1x128xf32, #tpu.memory_space<vmem>>, vector<9x16x1x128xf32>
    %3 = arith.mulf %2, %1 : vector<9x16x1x128xf32>
    %4 = vector.extract_strided_slice %3 {offsets = [0, 0, 0, 0], sizes = [8, 16, 1, 128], strides = [1, 1, 1, 1]} : vector<9x16x1x128xf32> to vector<8x16x1x128xf32>
    %5 = vector.shape_cast %4 : vector<8x16x1x128xf32> to vector<4x2x16x1x128xf32>
    %6 = vector.extract_strided_slice %5 {offsets = [0, 0, 0, 0, 0], sizes = [4, 1, 16, 1, 128], strides = [1, 1, 1, 1, 1]} : vector<4x2x16x1x128xf32> to vector<4x1x16x1x128xf32>
    %7 = vector.shape_cast %6 : vector<4x1x16x1x128xf32> to vector<4x16x1x128xf32>
    %8 = vector.extract_strided_slice %5 {offsets = [0, 1, 0, 0, 0], sizes = [4, 1, 16, 1, 128], strides = [1, 1, 1, 1, 1]} : vector<4x2x16x1x128xf32> to vector<4x1x16x1x128xf32>
    %9 = vector.shape_cast %8 : vector<4x1x16x1x128xf32> to vector<4x16x1x128xf32>
    %10 = vector.extract_strided_slice %5 {offsets = [1, 0, 0, 0, 0], sizes = [3, 1, 16, 1, 128], strides = [1, 1, 1, 1, 1]} : vector<4x2x16x1x128xf32> to vector<3x1x16x1x128xf32>
    %11 = vector.shape_cast %10 : vector<3x1x16x1x128xf32> to vector<3x16x1x128xf32>
    %12 = vector.extract_strided_slice %3 {offsets = [8, 0, 0, 0], sizes = [1, 16, 1, 128], strides = [1, 1, 1, 1]} : vector<9x16x1x128xf32> to vector<1x16x1x128xf32>
    %13 = tpu.concatenate %11, %12 in 0 : vector<3x16x1x128xf32>, vector<1x16x1x128xf32> -> vector<4x16x1x128xf32>
    %14 = arith.maximumf %7, %9 : vector<4x16x1x128xf32>
    %15 = arith.maximumf %14, %13 : vector<4x16x1x128xf32>
    %16 = vector.shape_cast %15 : vector<4x16x1x128xf32> to vector<4x8x2x1x128xf32>
    %17 = vector.extract_strided_slice %16 {offsets = [0, 0, 0, 0, 0], sizes = [4, 8, 1, 1, 128], strides = [1, 1, 1, 1, 1]} : vector<4x8x2x1x128xf32> to vector<4x8x1x1x128xf32>
    %18 = vector.shape_cast %17 : vector<4x8x1x1x128xf32> to vector<4x8x1x128xf32>
    %19 = vector.extract_strided_slice %16 {offsets = [0, 0, 1, 0, 0], sizes = [4, 8, 1, 1, 128], strides = [1, 1, 1, 1, 1]} : vector<4x8x2x1x128xf32> to vector<4x8x1x1x128xf32>
    %20 = vector.shape_cast %19 : vector<4x8x1x1x128xf32> to vector<4x8x1x128xf32>
    %21 = vector.extract_strided_slice %18 {offsets = [0, 0, 0, 0], sizes = [4, 1, 1, 128], strides = [1, 1, 1, 1]} : vector<4x8x1x128xf32> to vector<4x1x1x128xf32>
    %22 = vector.extract_strided_slice %20 {offsets = [0, 0, 0, 0], sizes = [4, 7, 1, 128], strides = [1, 1, 1, 1]} : vector<4x8x1x128xf32> to vector<4x7x1x128xf32>
    %23 = tpu.concatenate %21, %22 in 1 : vector<4x1x1x128xf32>, vector<4x7x1x128xf32> -> vector<4x8x1x128xf32>
    %24 = arith.maximumf %18, %20 : vector<4x8x1x128xf32>
    %25 = arith.maximumf %24, %23 : vector<4x8x1x128xf32>
    %26 = vector.extract_strided_slice %1 {offsets = [0, 0, 0, 0], sizes = [8, 16, 1, 128], strides = [1, 1, 1, 1]} : vector<9x16x1x128xf32> to vector<8x16x1x128xf32>
    %27 = vector.shape_cast %26 : vector<8x16x1x128xf32> to vector<4x2x16x1x128xf32>
    %28 = vector.extract_strided_slice %27 {offsets = [0, 0, 0, 0, 0], sizes = [4, 1, 16, 1, 128], strides = [1, 1, 1, 1, 1]} : vector<4x2x16x1x128xf32> to vector<4x1x16x1x128xf32>
    %29 = vector.shape_cast %28 : vector<4x1x16x1x128xf32> to vector<4x16x1x128xf32>
    %30 = vector.extract_strided_slice %27 {offsets = [0, 1, 0, 0, 0], sizes = [4, 1, 16, 1, 128], strides = [1, 1, 1, 1, 1]} : vector<4x2x16x1x128xf32> to vector<4x1x16x1x128xf32>
    %31 = vector.shape_cast %30 : vector<4x1x16x1x128xf32> to vector<4x16x1x128xf32>
    %32 = vector.extract_strided_slice %27 {offsets = [1, 0, 0, 0, 0], sizes = [3, 1, 16, 1, 128], strides = [1, 1, 1, 1, 1]} : vector<4x2x16x1x128xf32> to vector<3x1x16x1x128xf32>
    %33 = vector.shape_cast %32 : vector<3x1x16x1x128xf32> to vector<3x16x1x128xf32>
    %34 = vector.extract_strided_slice %1 {offsets = [8, 0, 0, 0], sizes = [1, 16, 1, 128], strides = [1, 1, 1, 1]} : vector<9x16x1x128xf32> to vector<1x16x1x128xf32>
    %35 = tpu.concatenate %33, %34 in 0 : vector<3x16x1x128xf32>, vector<1x16x1x128xf32> -> vector<4x16x1x128xf32>
    %36 = arith.maximumf %29, %31 : vector<4x16x1x128xf32>
    %37 = arith.maximumf %36, %35 : vector<4x16x1x128xf32>
    %38 = vector.shape_cast %37 : vector<4x16x1x128xf32> to vector<4x8x2x1x128xf32>
    %39 = vector.extract_strided_slice %38 {offsets = [0, 0, 0, 0, 0], sizes = [4, 8, 1, 1, 128], strides = [1, 1, 1, 1, 1]} : vector<4x8x2x1x128xf32> to vector<4x8x1x1x128xf32>
    %40 = vector.shape_cast %39 : vector<4x8x1x1x128xf32> to vector<4x8x1x128xf32>
    %41 = vector.extract_strided_slice %38 {offsets = [0, 0, 1, 0, 0], sizes = [4, 8, 1, 1, 128], strides = [1, 1, 1, 1, 1]} : vector<4x8x2x1x128xf32> to vector<4x8x1x1x128xf32>
    %42 = vector.shape_cast %41 : vector<4x8x1x1x128xf32> to vector<4x8x1x128xf32>
    %43 = vector.extract_strided_slice %40 {offsets = [0, 0, 0, 0], sizes = [4, 1, 1, 128], strides = [1, 1, 1, 1]} : vector<4x8x1x128xf32> to vector<4x1x1x128xf32>
    %44 = vector.extract_strided_slice %42 {offsets = [0, 0, 0, 0], sizes = [4, 7, 1, 128], strides = [1, 1, 1, 1]} : vector<4x8x1x128xf32> to vector<4x7x1x128xf32>
    %45 = tpu.concatenate %43, %44 in 1 : vector<4x1x1x128xf32>, vector<4x7x1x128xf32> -> vector<4x8x1x128xf32>
    %46 = arith.maximumf %40, %42 : vector<4x8x1x128xf32>
    %47 = arith.maximumf %46, %45 : vector<4x8x1x128xf32>
    %48 = arith.divf %25, %47 : vector<4x8x1x128xf32>
    %c0_7 = arith.constant 0 : index
    %c0_8 = arith.constant 0 : index
    %c0_9 = arith.constant 0 : index
    %c0_10 = arith.constant 0 : index
    %49 = vector.load %arg4[%c0_7, %c0_8, %c0_9, %c0_10] : memref<4x8x1x128xf32, #tpu.memory_space<vmem>>, vector<4x8x1x128xf32>
    tpu.vector_store %arg4[%c0_7, %c0_8, %c0_9, %c0_10], %48 {strides = array<i32>} : memref<4x8x1x128xf32, #tpu.memory_space<vmem>>, vector<4x8x1x128xf32>,
    return
  }
  func.func @transform_0(%arg0: i32, %arg1: i32) -> (i32, i32, i32, i32) {
    %c0_i32 = arith.constant 0 : i32
    %c0_i32_0 = arith.constant 0 : i32
    %c0_i32_1 = arith.constant 0 : i32
    return %arg0, %c0_i32, %arg1, %c0_i32_0 : i32, i32, i32, i32
  }
  func.func @transform_1(%arg0: i32, %arg1: i32) -> (i32, i32, i32, i32) {
    %c0_i32 = arith.constant 0 : i32
    %c0_i32_0 = arith.constant 0 : i32
    %c0_i32_1 = arith.constant 0 : i32
    return %arg0, %c0_i32, %arg1, %c0_i32_0 : i32, i32, i32, i32
  }
  func.func @transform_2(%arg0: i32, %arg1: i32) -> (i32, i32, i32, i32) {
    %c0_i32 = arith.constant 0 : i32
    %c0_i32_0 = arith.constant 0 : i32
    %c0_i32_1 = arith.constant 0 : i32
    return %arg0, %c0_i32, %arg1, %c0_i32_0 : i32, i32, i32, i32
  }
}

</mosaic_0001>

<bundles_post_ra>
// kernel: tpu_custom_call.1
= control target key start
LH: loop header
LB: loop body
LE: loop exit
PB: predicated region body
PF: predicated region fallthrough
CT: control target
= control target key end

     0   :  { %7 = vsyncpa [#allocation3], 0  ;;  %s3361_s0 = inlined_call_operand.hbm [shape: f32[18,16,1,128], index: 0, kind: input, shape index: {}]   ;;  %s3362_s1 = inlined_call_operand.hbm [shape: f32[18,16,1,128], index: 1, kind: input, shape index: {}]   ;;  %s3363_s2 = inlined_call_operand.hbm [shape: f32[8,8,1,128], index: 2, kind: output, shape index: {}]  }
   0x1   :  { %9 = vsyncpa [#allocation3 + $0x1], 0 }
   0x2   :  { %10 = vsyncpa [#allocation6], 0 }
   0x3   :  { %12 = vsyncpa [#allocation6 + $0x1], 0 }
   0x4   :  { %13 = vsyncpa [#allocation4], 0 }
   0x5   :  { %15 = vsyncpa [#allocation4 + $0x1], 0  ;;  %s2173_s9 = smov 0   ;;  %s2175_s10 = smov 0  }
   0x6   :  { %s2177_s11 = smov 0   ;;  %s2179_s12 = smov 0  }
   0x7   :  { %s2181_s13 = smov 0   ;;  %s2183_s14 = smov 0  }
   0x8 LB: > { %s1553_s15 = sadd.s32 4294967295, %s2149_s14   ;;  %s1554_s16 = sadd.s32 4294967294, %s2149_s14   ;;  %s2149_s14 = sphi %s2183_s14, %s21_s14   ;;  %s2145_s13 = sphi %s2181_s13, %s3387_s13   ;;  %s2141_s12 = sphi %s2179_s12, %s3386_s12   ;;  %s2137_s11 = sphi %s2177_s11, %s3385_s11   ;;  %s2133_s10 = sphi %s2175_s10, %s3384_s10   ;;  %s2129_s9 = sphi %s2173_s9, %s3383_s9  }
   0x9   : > { %s33_s17 = sadd.s32 1, %s2145_s13  ;;  %s42_s18 = sadd.s32 1, %s2137_s11 }
   0xa   : > { %p35_p0 = scmp.ge.s32.totalorder %s33_s17, 2  ;;  %p49_p1 = scmp.ne.s32.totalorder %s2137_s11, %s2133_s10 }
   0xb   : > { %p50_p2 = scmp.eq.s32.totalorder %s2149_s14, 0  ;;  %p55_p3 = scmp.ne.s32.totalorder %s2133_s10, %s2129_s9 }
   0xc   : > { %s3389_s17 = smov (%p35_p0, %s33_s17), 0  ;;  %p56_p5 = scmp.eq.s32.totalorder %s1553_s15, 0 }
   0xd   : > { %p2214_p4 = por %p50_p2, %p49_p1  ;;  %s37_s20 = ssub.s32 %s2145_s13, %s3389_s17 }
   0xe   : > { %p109_p6 = scmp.eq.s32.totalorder %s1553_s15, 1  ;;  %p40_p7 = scmp.eq.s32.totalorder %s37_s20, 0 }
   0xf   : > { %p2220_p8 = por %p56_p5, %p55_p3  ;;  %p115_p10 = scmp.eq.s32.totalorder %s1554_s16, 1 }
  0x10   : > { %p2224_p9 = por %p109_p6, %p49_p1  ;;  %p1597_p13 = scmp.lt.s32.totalorder %s2149_s14, 2 }
  0x11   : > { %s3369_s21 = scalar_select %p2220_p8, 1, 0 }
  0x12   : > { %s3370_s22 = scalar_select %p2224_p9, 1, 0 }
  0x13   : > { %s2229_s23 = scalar_select %p40_p7, %s2137_s11, %s42_s18  }
  0x14   : > { %p2231_p11 = por %p115_p10, %p55_p3  ;;  %s2238_s25 = sand.u32 1, %s2137_s11  }
  0x15   : > { %s1577_s26 = smul.u32 144, %s2238_s25  ;;  %p2244_p0 = pnand %p1597_p13, %p2214_p4 }
  0x16   : > { %s3371_s24 = scalar_select %p2231_p11, 1, 0 }
  0x17   : > { %s1575_s27 = smul.u32 2304, %s2145_s13  ;;  %s139_s4 = scalar_lea.vmem [#allocation2], %s1577_s26 }
  0x18   : > { %s148_s5 = sshll.u32 %s139_s4, 4  ;;  %s136_s6 = scalar_lea.sflag [#allocation3], %s2238_s25  ;;  %s2257_s5 = int_to_ptr.vmem [resolvable:$true] %s148_s5 }
  0x19   : > { %s2253_s3 = scalar_lea.hbm %s3361_s0, %s1575_s27  ;;  %p2005_p3 = pneg %p2244_p0 }
  0x1a   : > { %s2003_s7 = scalar_lea.hbm %s2253_s3, 2304  ;;  %s2008_s16 = scalar_lea.hbm %s3361_s0, 4608 }
  0x1b   : > { %p2004_p2 = scmp.ne.s32.totalorder %s2253_s3, %s2003_s7  ;;  %p2009_p6 = scmp.lt.u32.totalorder %s2253_s3, %s3361_s0 }
  0x1c   : > { %p2010_p7 = scmp.lt.u32.totalorder %s2008_s16, %s2003_s7  ;;  %p2012_p13 = scmp.lt.u32.totalorder %s2003_s7, %s2253_s3 }
  0x1d   : > { %p2006_p4 = pnand %p2005_p3, %p2004_p2 }
  0x1e   : > { %p2011_p10 = por %p2010_p7, %p2009_p6 }
  0x1f   : > { %p2007_p5 = pneg %p2006_p4 }
  0x20   : > { %p2013_p12 = por %p2012_p13, %p2011_p10 }
  0x22   : > { %p2014_p1 = pnand %p2013_p12, %p2007_p5 }
  0x24   : > { %2017 = shalt.err (!%p2014_p1)
}
  0x25   : > { %s2018_s20 = scalar_lea.vmem %s2257_s5, 2304  ;;  %s2151_s29 = smov [#allocation2]  }
  0x26   : > { %p2019_p2 = scmp.ne.s32.totalorder %s2257_s5, %s2018_s20  ;;  %s2023_s30 = sshll.u32 %s2151_s29, 4  ;;  %s2024_s30 = int_to_ptr.vmem [resolvable:$false] %s2023_s30 }
  0x27   : > { %s2025_s4 = scalar_lea.vmem %s2024_s30, 4608  ;;  %p2026_p9 = scmp.lt.s32.totalorder %s2257_s5, %s2024_s30 }
  0x28   : > { %p2021_p4 = pnand %p2019_p2, %p2005_p3  ;;  %p2027_p6 = scmp.lt.s32.totalorder %s2025_s4, %s2018_s20 }
  0x2a   : > { %p2022_p11 = pneg %p2021_p4  ;;  %p2028_p7 = por %p2027_p6, %p2026_p9 }
  0x2c   : > { %p2029_p10 = pnand %p2028_p7, %p2022_p11 }
  0x2e   : > { %2032 = shalt.err (!%p2029_p10)
}
  0x2f   : > { %s2152_s7 = smov 16   ;;  %s2153_s8 = smov 1  }
  0x30   : > { %1589 = dma.hbm_to_vmem [thread:$0]  (!%p2244_p0), %s2253_s3, 2304, %s2257_s5, %s136_s6, %s2152_s7, %s2152_s7, %s2153_s8  }
  0x31   : > { %p179_p9 = scmp.lt.s32.totalorder %s2149_s14, 3  ;;  %s2297_s18 = scalar_lea.hbm %s3362_s1, %s1575_s27 }
  0x32   : > { %p3373_p11 = scmp.ge.s32.totalorder %s2149_s14, 1  ;;  %s162_s20 = scalar_lea.vmem [#allocation5], %s1577_s26 }
  0x33   : > { %s171_s29 = sshll.u32 %s162_s20, 4  ;;  %s159_s3 = scalar_lea.sflag [#allocation6], %s2238_s25  ;;  %s2307_s29 = int_to_ptr.vmem [resolvable:$true] %s171_s29 }
  0x34   : > { %p2301_p12 = pnand %p3373_p11, %p179_p9  ;;  %s2033_s5 = scalar_lea.hbm %s2297_s18, 2304 }
  0x35   : > { %p2034_p1 = scmp.ne.s32.totalorder %s2297_s18, %s2033_s5  ;;  %s2038_s30 = scalar_lea.hbm %s3362_s1, 4608 }
  0x36   : > { %p2039_p2 = scmp.lt.u32.totalorder %s2297_s18, %s3362_s1  ;;  %p2040_p4 = scmp.lt.u32.totalorder %s2038_s30, %s2033_s5 }
  0x37   : > { %p2036_p5 = pnand %p2034_p1, %p2005_p3  ;;  %p2042_p7 = scmp.lt.u32.totalorder %s2033_s5, %s2297_s18 }
  0x38   : > { %p2041_p6 = por %p2040_p4, %p2039_p2 }
  0x39   : > { %p2037_p13 = pneg %p2036_p5 }
  0x3a   : > { %p2043_p10 = por %p2042_p7, %p2041_p6 }
  0x3c   : > { %p2044_p9 = pnand %p2043_p10, %p2037_p13 }
  0x3e   : > { %2047 = shalt.err (!%p2044_p9)
}
  0x3f   : > { %s2048_s26 = scalar_lea.vmem %s2307_s29, 2304  ;;  %s2154_s16 = smov [#allocation5]  }
  0x40   : > { %p2049_p11 = scmp.ne.s32.totalorder %s2307_s29, %s2048_s26  ;;  %s2053_s20 = sshll.u32 %s2154_s16, 4  ;;  %s2054_s20 = int_to_ptr.vmem [resolvable:$false] %s2053_s20 }
  0x41   : > { %s2055_s27 = scalar_lea.vmem %s2054_s20, 4608  ;;  %p2056_p8 = scmp.lt.s32.totalorder %s2307_s29, %s2054_s20 }
  0x42   : > { %p2051_p1 = pnand %p2049_p11, %p2005_p3  ;;  %p2057_p2 = scmp.lt.s32.totalorder %s2055_s27, %s2048_s26 }
  0x44   : > { %p2052_p5 = pneg %p2051_p1  ;;  %p2058_p4 = por %p2057_p2, %p2056_p8 }
  0x46   : > { %p2059_p6 = pnand %p2058_p4, %p2052_p5 }
  0x48   : > { %2062 = shalt.err (!%p2059_p6)
}
  0x49   : > { %1592 = dma.hbm_to_vmem [thread:$0]  (!%p2244_p0), %s2297_s18, 2304, %s2307_s29, %s159_s3, %s2152_s7, %s2152_s7, %s2153_s8  }
  0x4a   : > { %183 = sbr.rel (%p2301_p12) target bundleno = 360 (0x168), region = 28 }
  0x51   : > { %s2341_s5 = sand.u32 1, %s2133_s10   ;;  %p3375_p8 = scmp.ne.s32.totalorder %s3369_s21, 0 }
  0x52   : > { %s1579_s6 = smul.u32 144, %s2341_s5  ;;  %s186_s30 = scalar_lea.sflag [#allocation3], %s2341_s5 }
  0x54   : > { %s2345_s28 = scalar_lea.vmem [#allocation2], %s1579_s6 }
  0x55   : > { %2116 = dma.done.wait (%p3375_p8), %s186_s30, 2304  }
  0x56   : > { %2118 = vsyncadd (%p3375_p8), %s186_s30, 4294964992  ;;  %s195_s25 = scalar_lea.sflag [#allocation6], %s2341_s5  ;;  %s2352_s7 = scalar_lea.vmem [#allocation5], %s1579_s6 }
  0x57   : > { %2120 = dma.done.wait (%p3375_p8), %s195_s25, 2304  }
  0x58   : > { %2122 = vsyncadd (%p3375_p8), %s195_s25, 4294964992  ;;  %v227_v0 = vld [vmem:[%s2352_s7] sm:$0x1]  ;;  %v228_v1 = vld [vmem:[%s2352_s7 + $0x1] sm:$0x1]  ;;  %s1562_s21 = sshll.u32 %s2341_s5, 5 }
  0x59   : > { %v243_v2 = vld [vmem:[%s2352_s7 + $0x10] sm:$0x1]  ;;  %v244_v3 = vld [vmem:[%s2352_s7 + $0x11] sm:$0x1]  ;;  %v259_v4 = vld [vmem:[%s2352_s7 + $0x20] sm:$0x1] }
  0x5a   : > { %v260_v5 = vld [vmem:[%s2352_s7 + $0x21] sm:$0x1]  ;;  %v371_v6 = vmul.f32 1.442695, %v227_v0  ;;  %v373_v7 = vmul.f32 1.442695, %v228_v1 }
  0x5b   : > { %v403_v8 = vmul.f32 1.442695, %v243_v2  ;;  %v405_v9 = vmul.f32 1.442695, %v244_v3  ;;  %v435_v10 = vmul.f32 1.442695, %v259_v4 }
  0x5c   : > { %1651 = vpow2.f32 %v371_v6  ;;  %v437_v11 = vmul.f32 1.442695, %v260_v5  ;;  %v229_v12 = vld [vmem:[%s2352_s7 + $0x2] sm:$0x1]  ;;  %v230_v13 = vld [vmem:[%s2352_s7 + $0x3] sm:$0x1] }
  0x5d   : > { %1653 = vpow2.f32 %v373_v7  ;;  %v245_v14 = vld [vmem:[%s2352_s7 + $0x12] sm:$0x1]  ;;  %v246_v15 = vld [vmem:[%s2352_s7 + $0x13] sm:$0x1]  ;;  %v261_v16 = vld [vmem:[%s2352_s7 + $0x22] sm:$0x1] }
  0x5e   : > { %1655 = vpow2.f32 %v403_v8  ;;  %v262_v17 = vld [vmem:[%s2352_s7 + $0x23] sm:$0x1]  ;;  %v375_v18 = vmul.f32 1.442695, %v229_v12  ;;  %v377_v19 = vmul.f32 1.442695, %v230_v13 }
  0x5f   : > { %1657 = vpow2.f32 %v405_v9  ;;  %v407_v20 = vmul.f32 1.442695, %v245_v14  ;;  %v409_v21 = vmul.f32 1.442695, %v246_v15  ;;  %v439_v22 = vmul.f32 1.442695, %v261_v16 }
  0x60   : > { %1659 = vpow2.f32 %v435_v10  ;;  %v659_v23 = vld [vmem:[%s2345_s28] sm:$0x1]  ;;  %v660_v24 = vld [vmem:[%s2345_s28 + $0x1] sm:$0x1]  ;;  %v441_v25 = vmul.f32 1.442695, %v262_v17 }
  0x61   : > { %1661 = vpow2.f32 %v437_v11  ;;  %v675_v26 = vld [vmem:[%s2345_s28 + $0x10] sm:$0x1]  ;;  %v231_v27 = vld [vmem:[%s2352_s7 + $0x4] sm:$0x1]  ;;  %v232_v28 = vld [vmem:[%s2352_s7 + $0x5] sm:$0x1] }
  0x62   : > { %1663 = vpow2.f32 %v375_v18  ;;  %v247_v29 = vld [vmem:[%s2352_s7 + $0x14] sm:$0x1]  ;;  %v248_v30 = vld [vmem:[%s2352_s7 + $0x15] sm:$0x1]  ;;  %v263_v31 = vld [vmem:[%s2352_s7 + $0x24] sm:$0x1] }
  0x63   : > { %1665 = vpow2.f32 %v377_v19  ;;  %v264_v32 = vld [vmem:[%s2352_s7 + $0x25] sm:$0x1]  ;;  %v379_v34 = vmul.f32 1.442695, %v231_v27  ;;  %v381_v35 = vmul.f32 1.442695, %v232_v28 }
  0x64   : > { %1667 = vpow2.f32 %v407_v20  ;;  %v411_v36 = vmul.f32 1.442695, %v247_v29  ;;  %v676_v38 = vld [vmem:[%s2345_s28 + $0x11] sm:$0x1]  ;;  %v413_v40 = vmul.f32 1.442695, %v248_v30 }
  0x65   : > { %1669 = vpow2.f32 %v409_v21  ;;  %v691_v42 = vld [vmem:[%s2345_s28 + $0x20] sm:$0x1]  ;;  %v443_v44 = vmul.f32 1.442695, %v263_v31  ;;  %v692_v46 = vld [vmem:[%s2345_s28 + $0x21] sm:$0x1] }
  0x66   : > { %v1652_v33 = vpop.eup %1651  ;;  %1671 = vpow2.f32 %v439_v22  ;;  %v445_v49 = vmul.f32 1.442695, %v264_v32  ;;  %v661_v53 = vld [vmem:[%s2345_s28 + $0x2] sm:$0x1]  ;;  %v233_v54 = vld [vmem:[%s2352_s7 + $0x6] sm:$0x1] }
  0x67   : > { %v1654_v37 = vpop.eup %1653  ;;  %v803_v39 = vmul.f32 %v1652_v33, %v659_v23  ;;  %1673 = vpow2.f32 %v441_v25  ;;  %v662_v59 = vld [vmem:[%s2345_s28 + $0x3] sm:$0x1]  ;;  %v677_v0 = vld [vmem:[%s2345_s28 + $0x12] sm:$0x1]  ;;  %v234_v1 = vld [vmem:[%s2352_s7 + $0x7] sm:$0x1] }
  0x68   : > { %v1656_v41 = vpop.eup %1655  ;;  %v804_v43 = vmul.f32 %v1654_v37, %v660_v24  ;;  %1675 = vpow2.f32 %v379_v34  ;;  %v678_v3 = vld [vmem:[%s2345_s28 + $0x13] sm:$0x1]  ;;  %v249_v5 = vld [vmem:[%s2352_s7 + $0x16] sm:$0x1]  ;;  %v383_v6 = vmul.f32 1.442695, %v233_v54 }
  0x69   : > { %v1658_v45 = vpop.eup %1657  ;;  %v819_v47 = vmul.f32 %v1656_v41, %v675_v26  ;;  %v1139_v48 = vmax.f32 %v1652_v33, %v1656_v41  ;;  %1677 = vpow2.f32 %v381_v35  ;;  %v693_v13 = vld [vmem:[%s2345_s28 + $0x22] sm:$0x1]  ;;  %v385_v16 = vmul.f32 1.442695, %v234_v1  ;;  %v694_v19 = vld [vmem:[%s2345_s28 + $0x23] sm:$0x1] }
  0x6a   : > { %v2382_v50 = vpop.eup %1659  ;;  %v820_v51 = vmul.f32 %v1658_v45, %v676_v38  ;;  %v1140_v52 = vmax.f32 %v1654_v37, %v1658_v45  ;;  %1679 = vpow2.f32 %v411_v36  ;;  %v663_v22 = vld [vmem:[%s2345_s28 + $0x4] sm:$0x1]  ;;  %v415_v23 = vmul.f32 1.442695, %v249_v5  ;;  %v664_v27 = vld [vmem:[%s2345_s28 + $0x5] sm:$0x1] }
  0x6b   : > { %v2386_v55 = vpop.eup %1661  ;;  %v2389_v56 = vmul.f32 %v2382_v50, %v691_v42  ;;  %v947_v57 = vmax.f32 %v803_v39, %v819_v47  ;;  %v1203_v58 = vmax.f32 %v1139_v48, %v2382_v50  ;;  %1681 = vpow2.f32 %v413_v40  ;;  %v250_v28 = vld [vmem:[%s2352_s7 + $0x17] sm:$0x1]  ;;  %v679_v33 = vld [vmem:[%s2345_s28 + $0x14] sm:$0x1]  ;;  %v680_v37 = vld [vmem:[%s2345_s28 + $0x15] sm:$0x1] }
  0x6c   : > { %v1664_v60 = vpop.eup %1663  ;;  %v2394_v61 = vmul.f32 %v2386_v55, %v692_v46  ;;  %v948_v62 = vmax.f32 %v804_v43, %v820_v51  ;;  %v2397_v63 = vmax.f32 %v1140_v52, %v2386_v55  ;;  %1683 = vpow2.f32 %v443_v44  ;;  %v265_v39 = vld [vmem:[%s2352_s7 + $0x26] sm:$0x1]  ;;  %v266_v43 = vld [vmem:[%s2352_s7 + $0x27] sm:$0x1]  ;;  %v695_v48 = vld [vmem:[%s2345_s28 + $0x24] sm:$0x1] }
  0x6d   : > { %v1666_v2 = vpop.eup %1665  ;;  %v805_v4 = vmul.f32 %v1664_v60, %v661_v53  ;;  %1685 = vpow2.f32 %v445_v49  ;;  %v1011_v8 = vmax.f32 %v947_v57, %v2389_v56  ;;  %v417_v44 = vmul.f32 1.442695, %v250_v28  ;;  %v696_v49 = vld [vmem:[%s2345_s28 + $0x25] sm:$0x1]  ;;  %v237_v28 = vld [vmem:[%s2352_s7 + $0xa] sm:$0x1] }
  0x6e   : > { %v1668_v7 = vpop.eup %1667  ;;  %v2405_v9 = vmax.f32 %v948_v62, %v2394_v61  ;;  %v1267_v10 = vmax.f32 %v1203_v58, %v2397_v63  ;;  %v806_v11 = vmul.f32 %v1666_v2, %v662_v59  ;;  %1687 = vpow2.f32 %v383_v6  ;;  %v235_v59 = vld [vmem:[%s2352_s7 + $0x8] sm:$0x1]  ;;  %s2476_s8 = scalar_lea.vmem [#allocation7], %s1562_s21  ;;  %s1574_s18 = sshll.u32 %s2141_s12, 9 }
  0x6f   : > { %v1670_v12 = vpop.eup %1669  ;;  %v821_v14 = vmul.f32 %v1668_v7, %v677_v0  ;;  %v1141_v15 = vmax.f32 %v1664_v60, %v1668_v7  ;;  %v236_v60 = vld [vmem:[%s2352_s7 + $0x9] sm:$0x1]  ;;  %s1443_s19 = sshll.u32 %s2476_s8, 4  ;;  %s3309_s4 = scalar_lea.hbm %s3363_s2, %s1574_s18  ;;  %s3311_s19 = int_to_ptr.vmem [resolvable:$true] %s1443_s19 }
  0x70   : > { %v2409_v17 = vpop.eup %1671  ;;  %v1299_v18 = vmax.f32 %v1267_v10, %v1203_v58  ;;  %v822_v20 = vmul.f32 %v1670_v12, %v678_v3  ;;  %v1142_v21 = vmax.f32 %v1666_v2, %v1670_v12  ;;  %v1075_v30 = vmax.f32 %v1011_v8, %v2405_v9  ;;  %v251_v10 = vld [vmem:[%s2352_s7 + $0x18] sm:$0x1]  ;;  %s1428_s15 = scalar_lea.sflag [#allocation4], %s2341_s5  ;;  %s2063_s26 = scalar_lea.vmem %s3311_s19, 512 }
  0x71   : > { %v2413_v24 = vpop.eup %1673  ;;  %v949_v25 = vmax.f32 %v805_v4, %v821_v14  ;;  %v1205_v26 = vmax.f32 %v1141_v15, %v2409_v17  ;;  %v2420_v31 = vmul.f32 %v2409_v17, %v693_v13  ;;  %v447_v58 = vmul.f32 1.442695, %v265_v39  ;;  %v267_v15 = vld [vmem:[%s2352_s7 + $0x28] sm:$0x1]  ;;  %v682_v39 = vld [vmem:[%s2345_s28 + $0x17] sm:$0x1]  ;;  %p2064_p0 = scmp.ne.s32.totalorder %s3311_s19, %s2063_s26 }
  0x72   : > { %v1676_v29 = vpop.eup %1675  ;;  %1689 = vrcp.f32 %v1299_v18  ;;  %v950_v32 = vmax.f32 %v806_v11, %v822_v20  ;;  %v2424_v35 = vmul.f32 %v2413_v24, %v694_v19  ;;  %v1206_v36 = vmax.f32 %v1142_v21, %v2413_v24  ;;  %v665_v20 = vld [vmem:[%s2345_s28 + $0x6] sm:$0x1]  ;;  %v268_v21 = vld [vmem:[%s2352_s7 + $0x29] sm:$0x1]  ;;  %p3380_p3 = scmp.ne.s32.totalorder %s3370_s22, 0  ;;  %s2155_s12 = smov [#allocation7]  }
  0x73   : > { %v1678_v34 = vpop.eup %1677  ;;  %v807_v38 = vmul.f32 %v1676_v29, %v663_v22  ;;  %1691 = vpow2.f32 %v385_v16  ;;  %v1013_v41 = vmax.f32 %v949_v25, %v2420_v31  ;;  %v449_v3 = vmul.f32 1.442695, %v266_v43  ;;  %v254_v43 = vld [vmem:[%s2352_s7 + $0x1b] sm:$0x1]  ;;  %s2067_s16 = sshll.u32 %s2155_s12, 4  ;;  %s2068_s16 = int_to_ptr.vmem [resolvable:$false] %s2067_s16 }
  0x74   : > { %v1680_v40 = vpop.eup %1679  ;;  %v808_v42 = vmul.f32 %v1678_v34, %v664_v27  ;;  %1693 = vpow2.f32 %v415_v23  ;;  %v2432_v46 = vmax.f32 %v950_v32, %v2424_v35  ;;  %v1268_v47 = vmax.f32 %v1205_v26, %v1206_v36  ;;  %v666_v26 = vld [vmem:[%s2345_s28 + $0x7] sm:$0x1]  ;;  %v681_v32 = vld [vmem:[%s2345_s28 + $0x16] sm:$0x1]  ;;  %p2065_p12 = pnand %p2064_p0, %p3380_p3  ;;  %s2069_s20 = scalar_lea.vmem %s2068_s16, 1024 }
  0x75   : > { %v1682_v45 = vpop.eup %1681  ;;  %v823_v51 = vmul.f32 %v1680_v40, %v679_v33  ;;  %v1143_v52 = vmax.f32 %v1676_v29, %v1680_v40  ;;  %1695 = vpow2.f32 %v417_v44  ;;  %v1107_v4 = vmax.f32 %v1075_v30, %v1011_v8  ;;  %v253_v40 = vld [vmem:[%s2352_s7 + $0x1a] sm:$0x1]  ;;  %p2070_p7 = scmp.lt.s32.totalorder %s3311_s19, %s2068_s16  ;;  %p2071_p10 = scmp.lt.s32.totalorder %s2069_s20, %s2063_s26 }
  0x76   : > { %v2436_v53 = vpop.eup %1683  ;;  %v824_v54 = vmul.f32 %v1682_v45, %v680_v37  ;;  %v1144_v57 = vmax.f32 %v1678_v34, %v1682_v45  ;;  %v1300_v0 = vmax.f32 %v1268_v47, %v2397_v63  ;;  %v252_v63 = vld [vmem:[%s2352_s7 + $0x19] sm:$0x1]  ;;  %v387_v12 = vmul.f32 1.442695, %v235_v59  ;;  %v238_v34 = vld [vmem:[%s2352_s7 + $0xb] sm:$0x1]  ;;  %p2066_p13 = pneg %p2065_p12 }
  0x77   : > { %v2440_v62 = vpop.eup %1685  ;;  %v951_v1 = vmax.f32 %v807_v38, %v823_v51  ;;  %v1207_v2 = vmax.f32 %v1143_v52, %v2436_v53  ;;  %v2446_v5 = vmul.f32 %v2436_v53, %v695_v48  ;;  %v389_v13 = vmul.f32 1.442695, %v236_v60  ;;  %v269_v48 = vld [vmem:[%s2352_s7 + $0x2a] sm:$0x1]  ;;  %p2072_p9 = por %p2071_p10, %p2070_p7 }
  0x78   : > { %v952_v6 = vmax.f32 %v808_v42, %v824_v54  ;;  %v2449_v7 = vmax.f32 %v1144_v57, %v2440_v62  ;;  %1697 = vrcp.f32 %v1300_v0  ;;  %v2453_v11 = vmul.f32 %v2440_v62, %v696_v49  ;;  %v2459_v16 = vpop.eup %1687  ;;  %v270_v54 = vld [vmem:[%s2352_s7 + $0x2b] sm:$0x1]  ;;  %v239_v0 = vld [vmem:[%s2352_s7 + $0xc] sm:$0x1] }
  0x79   : > { %v1076_v8 = vmax.f32 %v1013_v41, %v2432_v46  ;;  %1699 = vpow2.f32 %v447_v58  ;;  %v1015_v18 = vmax.f32 %v951_v1, %v2446_v5  ;;  %v419_v22 = vmul.f32 1.442695, %v251_v10  ;;  %v697_v58 = vld [vmem:[%s2345_s28 + $0x26] sm:$0x1]  ;;  %p2073_p11 = pnand %p2072_p9, %p2066_p13 }
  0x7a   : > { %v1269_v14 = vmax.f32 %v1207_v2, %v2449_v7  ;;  %v2463_v19 = vmax.f32 %v952_v6, %v2453_v11  ;;  %1701 = vpow2.f32 %v449_v3  ;;  %v421_v27 = vmul.f32 1.442695, %v252_v63  ;;  %v698_v3 = vld [vmem:[%s2345_s28 + $0x27] sm:$0x1]  ;;  %v240_v6 = vld [vmem:[%s2352_s7 + $0xd] sm:$0x1] }
  0x7b   : > { %1703 = vpow2.f32 %v387_v12  ;;  %v451_v33 = vmul.f32 1.442695, %v267_v15  ;;  %v1108_v38 = vmax.f32 %v1076_v8, %v2405_v9  ;;  %v809_v42 = vmul.f32 %v2459_v16, %v665_v20  ;;  %v256_v15 = vld [vmem:[%s2352_s7 + $0x1d] sm:$0x1]  ;;  %v271_v20 = vld [vmem:[%s2352_s7 + $0x2c] sm:$0x1] }
  0x7c   : > { %v1690_v23 = vpop.eup %1689  ;;  %v1301_v25 = vmax.f32 %v1269_v14, %v1206_v36  ;;  %1705 = vpow2.f32 %v389_v13  ;;  %v453_v36 = vmul.f32 1.442695, %v268_v21  ;;  %v1077_v41 = vmax.f32 %v1015_v18, %v2463_v19  ;;  %v667_v13 = vld [vmem:[%s2345_s28 + $0x8] sm:$0x1]  ;;  %v255_v14 = vld [vmem:[%s2352_s7 + $0x1c] sm:$0x1] }
  0x7d   : > { %v1692_v29 = vpop.eup %1691  ;;  %v1332_v30 = vmul.f32 %v1690_v23, %v1107_v4  ;;  %v391_v44 = vmul.f32 1.442695, %v237_v28  ;;  %v393_v49 = vmul.f32 1.442695, %v238_v34  ;;  %v423_v57 = vmul.f32 1.442695, %v253_v40 }
  0x7e   : > { %v1694_v37 = vpop.eup %1693  ;;  %1707 = vrcp.f32 %v1301_v25  ;;  %v810_v45 = vmul.f32 %v1692_v29, %v666_v26  ;;  %v425_v60 = vmul.f32 1.442695, %v254_v43  ;;  %v1109_v2 = vmax.f32 %v1077_v41, %v2432_v46  ;;  %v272_v21 = vld [vmem:[%s2352_s7 + $0x2d] sm:$0x1]  ;;  %v683_v28 = vld [vmem:[%s2345_s28 + $0x18] sm:$0x1] }
  0x7f   : > { %1395 = vst [vmem:[%s2476_s8] sm:$0x1] %v1332_v30  ;;  %1709 = vpow2.f32 %v419_v22  ;;  %v1696_v9 = vpop.eup %1695  ;;  %v825_v47 = vmul.f32 %v1694_v37, %v681_v32  ;;  %v1145_v52 = vmax.f32 %v2459_v16, %v1694_v37  ;;  %v455_v4 = vmul.f32 1.442695, %v269_v48  ;;  %v257_v48 = vld [vmem:[%s2352_s7 + $0x1e] sm:$0x1] }
  0x80   : > { %1711 = vpow2.f32 %v421_v27  ;;  %v826_v51 = vmul.f32 %v1696_v9, %v682_v39  ;;  %v1146_v59 = vmax.f32 %v1692_v29, %v1696_v9  ;;  %v457_v8 = vmul.f32 1.442695, %v270_v54  ;;  %v668_v27 = vld [vmem:[%s2345_s28 + $0x9] sm:$0x1]  ;;  %v699_v54 = vld [vmem:[%s2345_s28 + $0x28] sm:$0x1] }
  0x81   : > { %1713 = vpow2.f32 %v451_v33  ;;  %v953_v12 = vmax.f32 %v809_v42, %v825_v47  ;;  %v395_v22 = vmul.f32 1.442695, %v239_v0  ;;  %v397_v29 = vmul.f32 1.442695, %v240_v6  ;;  %v684_v33 = vld [vmem:[%s2345_s28 + $0x19] sm:$0x1] }
  0x82   : > { %1715 = vpow2.f32 %v453_v36  ;;  %v1698_v1 = vpop.eup %1697  ;;  %v954_v46 = vmax.f32 %v810_v45, %v826_v51  ;;  %v427_v34 = vmul.f32 1.442695, %v255_v14  ;;  %v429_v37 = vmul.f32 1.442695, %v256_v15  ;;  %v241_v42 = vld [vmem:[%s2352_s7 + $0xe] sm:$0x1] }
  0x83   : > { %1717 = vpow2.f32 %v391_v44  ;;  %v2490_v10 = vpop.eup %1699  ;;  %v1334_v63 = vmul.f32 %v1698_v1, %v1108_v38  ;;  %v459_v40 = vmul.f32 1.442695, %v271_v20  ;;  %v2517_v41 = vmul.f32 1.442695, %v272_v21  ;;  %v242_v47 = vld [vmem:[%s2352_s7 + $0xf] sm:$0x1] }
  0x84   : > { %1719 = vpow2.f32 %v393_v49  ;;  %v2495_v16 = vpop.eup %1701  ;;  %v1209_v18 = vmax.f32 %v1145_v52, %v2490_v10  ;;  %v2502_v25 = vmul.f32 %v2490_v10, %v697_v58  ;;  %v258_v49 = vld [vmem:[%s2352_s7 + $0x1f] sm:$0x1]  ;;  %v700_v14 = vld [vmem:[%s2345_s28 + $0x29] sm:$0x1] }
  0x85   : > { %1721 = vpow2.f32 %v423_v57  ;;  %v1704_v23 = vpop.eup %1703  ;;  %1396 = vst [vmem:[%s2476_s8 + $0x1] sm:$0x1] %v1334_v63  ;;  %v2505_v26 = vmax.f32 %v1146_v59, %v2495_v16  ;;  %v2510_v32 = vmul.f32 %v2495_v16, %v698_v3  ;;  %v670_v3 = vld [vmem:[%s2345_s28 + $0xb] sm:$0x1]  ;;  %v431_v63 = vmul.f32 1.442695, %v257_v48 }
  0x86   : > { %1723 = vpow2.f32 %v425_v60  ;;  %v1706_v30 = vpop.eup %1705  ;;  %v2514_v39 = vmax.f32 %v953_v12, %v2502_v25  ;;  %v811_v45 = vmul.f32 %v1704_v23, %v667_v13  ;;  %v2535_v12 = vmul.f32 1.442695, %v258_v49  ;;  %v274_v48 = vld [vmem:[%s2352_s7 + $0x2f] sm:$0x1] }
  0x87   : > { %1725 = vpow2.f32 %v455_v4  ;;  %v1270_v36 = vmax.f32 %v1209_v18, %v2505_v26  ;;  %v2521_v9 = vmax.f32 %v954_v46, %v2510_v32  ;;  %v812_v57 = vmul.f32 %v1706_v30, %v668_v27  ;;  %v685_v18 = vld [vmem:[%s2345_s28 + $0x1a] sm:$0x1]  ;;  %v686_v27 = vld [vmem:[%s2345_s28 + $0x1b] sm:$0x1] }
  0x88   : > { %v1708_v38 = vpop.eup %1707  ;;  %1727 = vpow2.f32 %v457_v8  ;;  %v399_v4 = vmul.f32 1.442695, %v241_v42 }
  0x89   : > { %v1710_v43 = vpop.eup %1709  ;;  %v1336_v44 = vmul.f32 %v1708_v38, %v1109_v2  ;;  %v1302_v52 = vmax.f32 %v1270_v36, %v2449_v7  ;;  %v669_v2 = vld [vmem:[%s2345_s28 + $0xa] sm:$0x1]  ;;  %1729 = vpow2.f32 %v395_v22  ;;  %v401_v7 = vmul.f32 1.442695, %v242_v47 }
  0x8a   : > { %v1712_v51 = vpop.eup %1711  ;;  %v827_v58 = vmul.f32 %v1710_v43, %v683_v28  ;;  %v1147_v59 = vmax.f32 %v1704_v23, %v1710_v43  ;;  %v1078_v8 = vmax.f32 %v2514_v39, %v2521_v9  ;;  %v273_v28 = vld [vmem:[%s2352_s7 + $0x2e] sm:$0x1] }
  0x8b   : > { %v2528_v60 = vpop.eup %1713  ;;  %1397 = vst [vmem:[%s2476_s8 + $0x2] sm:$0x1] %v1336_v44  ;;  %v828_v0 = vmul.f32 %v1712_v51, %v684_v33  ;;  %v1148_v1 = vmax.f32 %v1706_v30, %v1712_v51  ;;  %1731 = vrcp.f32 %v1302_v52  ;;  %v463_v49 = vmul.f32 1.442695, %v273_v28  ;;  %v275_v51 = vld [vmem:[%s2352_s7 + $0x30] sm:$0x1] }
  0x8c   : > { %v2533_v6 = vpop.eup %1715  ;;  %v1211_v15 = vmax.f32 %v1147_v59, %v2528_v60  ;;  %1733 = vpow2.f32 %v397_v29  ;;  %v2546_v21 = vmul.f32 %v2528_v60, %v699_v54  ;;  %v955_v22 = vmax.f32 %v811_v45, %v827_v58  ;;  %v701_v54 = vld [vmem:[%s2345_s28 + $0x2a] sm:$0x1]  ;;  %v292_v28 = vld [vmem:[%s2352_s7 + $0x41] sm:$0x1] }
  0x8d   : > { %v1718_v13 = vpop.eup %1717  ;;  %v2542_v46 = vmax.f32 %v1148_v1, %v2533_v6  ;;  %v956_v23 = vmax.f32 %v812_v57, %v828_v0  ;;  %1735 = vpow2.f32 %v427_v34  ;;  %v2552_v36 = vmul.f32 %v2533_v6, %v700_v14  ;;  %v702_v57 = vld [vmem:[%s2345_s28 + $0x2b] sm:$0x1] }
  0x8e   : > { %v1720_v20 = vpop.eup %1719  ;;  %v813_v38 = vmul.f32 %v1718_v13, %v669_v2  ;;  %1737 = vpow2.f32 %v429_v37  ;;  %v1019_v37 = vmax.f32 %v955_v22, %v2546_v21  ;;  %v1110_v59 = vmax.f32 %v1078_v8, %v2463_v19  ;;  %v291_v2 = vld [vmem:[%s2352_s7 + $0x40] sm:$0x1]  ;;  %v671_v19 = vld [vmem:[%s2345_s28 + $0xc] sm:$0x1]  ;;  %v672_v8 = vld [vmem:[%s2345_s28 + $0xd] sm:$0x1] }
  0x8f   : > { %v1722_v30 = vpop.eup %1721  ;;  %v1271_v33 = vmax.f32 %v1211_v15, %v2542_v46  ;;  %v814_v39 = vmul.f32 %v1720_v20, %v670_v3  ;;  %1739 = vpow2.f32 %v459_v40  ;;  %v2561_v52 = vmax.f32 %v956_v23, %v2552_v36 }
  0x90   : > { %v1724_v29 = vpop.eup %1723  ;;  %v829_v42 = vmul.f32 %v1722_v30, %v685_v18  ;;  %v1149_v43 = vmax.f32 %v1718_v13, %v1722_v30  ;;  %1741 = vpow2.f32 %v2517_v41  ;;  %v465_v13 = vmul.f32 1.442695, %v274_v48 }
  0x91   : > { %v2554_v34 = vpop.eup %1725  ;;  %v1303_v44 = vmax.f32 %v1271_v33, %v2505_v26  ;;  %v830_v45 = vmul.f32 %v1724_v29, %v686_v27  ;;  %v1150_v47 = vmax.f32 %v1720_v20, %v1724_v29  ;;  %v276_v26 = vld [vmem:[%s2352_s7 + $0x31] sm:$0x1]  ;;  %v467_v14 = vmul.f32 1.442695, %v275_v51 }
  0x92   : > { %v1213_v58 = vmax.f32 %v1149_v43, %v2554_v34  ;;  %v2568_v40 = vpop.eup %1727  ;;  %v957_v0 = vmax.f32 %v813_v38, %v829_v42  ;;  %v2576_v41 = vmul.f32 %v2554_v34, %v701_v54  ;;  %v469_v20 = vmul.f32 1.442695, %v276_v26  ;;  %v278_v54 = vld [vmem:[%s2352_s7 + $0x33] sm:$0x1] }
  0x93   : > { %1743 = vrcp.f32 %v1303_v44  ;;  %v958_v1 = vmax.f32 %v814_v39, %v830_v45  ;;  %v2573_v3 = vmax.f32 %v1150_v47, %v2568_v40  ;;  %v1730_v15 = vpop.eup %1729  ;;  %v2579_v18 = vmul.f32 %v2568_v40, %v702_v57  ;;  %v277_v45 = vld [vmem:[%s2352_s7 + $0x32] sm:$0x1] }
  0x94   : > { %1745 = vpow2.f32 %v399_v4  ;;  %v1079_v23 = vmax.f32 %v1019_v37, %v2561_v52  ;;  %v687_v4 = vld [vmem:[%s2345_s28 + $0x1c] sm:$0x1]  ;;  %v499_v30 = vmul.f32 1.442695, %v291_v2  ;;  %v1021_v39 = vmax.f32 %v957_v0, %v2576_v41  ;;  %v704_v0 = vld [vmem:[%s2345_s28 + $0x2d] sm:$0x1] }
  0x95   : > { %1747 = vpow2.f32 %v401_v7  ;;  %v1732_v22 = vpop.eup %1731  ;;  %v1272_v27 = vmax.f32 %v1213_v58, %v2573_v3  ;;  %v2589_v29 = vmax.f32 %v958_v1, %v2579_v18  ;;  %v688_v7 = vld [vmem:[%s2345_s28 + $0x1d] sm:$0x1]  ;;  %v815_v44 = vmul.f32 %v1730_v15, %v671_v19 }
  0x96   : > { %1749 = vpow2.f32 %v431_v63  ;;  %v1734_v33 = vpop.eup %1733  ;;  %v1338_v38 = vmul.f32 %v1732_v22, %v1110_v59  ;;  %v501_v37 = vmul.f32 1.442695, %v292_v28  ;;  %v703_v59 = vld [vmem:[%s2345_s28 + $0x2c] sm:$0x1]  ;;  %v471_v2 = vmul.f32 1.442695, %v277_v45 }
  0x97   : > { %1751 = vpow2.f32 %v2535_v12  ;;  %v1736_v42 = vpop.eup %1735  ;;  %v1304_v43 = vmax.f32 %v1272_v27, %v2542_v46  ;;  %v816_v63 = vmul.f32 %v1734_v33, %v672_v8  ;;  %v1111_v12 = vmax.f32 %v1079_v23, %v2521_v9  ;;  %v294_v9 = vld [vmem:[%s2352_s7 + $0x43] sm:$0x1]  ;;  %v673_v27 = vld [vmem:[%s2345_s28 + $0xe] sm:$0x1] }
  0x98   : > { %1753 = vpow2.f32 %v463_v49  ;;  %v1738_v47 = vpop.eup %1737  ;;  %1398 = vst [vmem:[%s2476_s8 + $0x3] sm:$0x1] %v1338_v38  ;;  %v831_v48 = vmul.f32 %v1736_v42, %v687_v4  ;;  %v1151_v51 = vmax.f32 %v1730_v15, %v1736_v42  ;;  %v293_v49 = vld [vmem:[%s2352_s7 + $0x42] sm:$0x1]  ;;  %v1080_v26 = vmax.f32 %v1021_v39, %v2589_v29  ;;  %v689_v39 = vld [vmem:[%s2345_s28 + $0x1e] sm:$0x1] }
  0x99   : > { %1755 = vpow2.f32 %v465_v13  ;;  %v2597_v57 = vpop.eup %1739  ;;  %v832_v46 = vmul.f32 %v1738_v47, %v688_v7  ;;  %v1152_v58 = vmax.f32 %v1734_v33, %v1738_v47  ;;  %v473_v8 = vmul.f32 1.442695, %v278_v54 }
  0x9a   : > { %1757 = vrcp.f32 %v1304_v43  ;;  %v1215_v1 = vmax.f32 %v1151_v51, %v2597_v57  ;;  %v2605_v13 = vpop.eup %1741  ;;  %v959_v15 = vmax.f32 %v815_v44, %v831_v48  ;;  %v503_v4 = vmul.f32 1.442695, %v293_v49 }
  0x9b   : > { %1759 = vpow2.f32 %v467_v14  ;;  %v960_v19 = vmax.f32 %v816_v63, %v832_v46  ;;  %v2609_v23 = vmax.f32 %v1152_v58, %v2605_v13  ;;  %v2613_v33 = vmul.f32 %v2597_v57, %v703_v59  ;;  %v279_v46 = vld [vmem:[%s2352_s7 + $0x34] sm:$0x1] }
  0x9c   : > { %1761 = vpow2.f32 %v469_v20  ;;  %v2616_v38 = vmul.f32 %v2605_v13, %v704_v0  ;;  %v674_v20 = vld [vmem:[%s2345_s28 + $0xf] sm:$0x1]  ;;  %v1112_v42 = vmax.f32 %v1080_v26, %v2561_v52  ;;  %v505_v44 = vmul.f32 1.442695, %v294_v9  ;;  %v705_v0 = vld [vmem:[%s2345_s28 + $0x2e] sm:$0x1] }
  0x9d   : > { %v1744_v22 = vpop.eup %1743  ;;  %1763 = vpow2.f32 %v499_v30  ;;  %v1273_v43 = vmax.f32 %v1215_v1, %v2609_v23  ;;  %v690_v30 = vld [vmem:[%s2345_s28 + $0x1f] sm:$0x1]  ;;  %v1023_v45 = vmax.f32 %v959_v15, %v2613_v33  ;;  %v706_v1 = vld [vmem:[%s2345_s28 + $0x2f] sm:$0x1] }
  0x9e   : > { %v1746_v14 = vpop.eup %1745  ;;  %v1340_v28 = vmul.f32 %v1744_v22, %v1111_v12  ;;  %1765 = vpow2.f32 %v501_v37  ;;  %v2626_v47 = vmax.f32 %v960_v19, %v2616_v38  ;;  %v280_v22 = vld [vmem:[%s2352_s7 + $0x35] sm:$0x1] }
  0x9f   : > { %v1748_v7 = vpop.eup %1747  ;;  %1767 = vpow2.f32 %v471_v2  ;;  %v817_v48 = vmul.f32 %v1746_v14, %v673_v27  ;;  %v1305_v52 = vmax.f32 %v1273_v43, %v2573_v3  ;;  %v707_v2 = vld [vmem:[%s2345_s28 + $0x30] sm:$0x1]  ;;  %v475_v27 = vmul.f32 1.442695, %v279_v46 }
  0xa0   : > { %v1750_v63 = vpop.eup %1749  ;;  %1399 = vst [vmem:[%s2476_s8 + $0x4] sm:$0x1] %v1340_v28  ;;  %1769 = vpow2.f32 %v473_v8  ;;  %v818_v37 = vmul.f32 %v1748_v7, %v674_v20  ;;  %v708_v8 = vld [vmem:[%s2345_s28 + $0x31] sm:$0x1]  ;;  %v1081_v28 = vmax.f32 %v1023_v45, %v2626_v47 }
  0xa1   : > { %v1752_v51 = vpop.eup %1751  ;;  %v833_v54 = vmul.f32 %v1750_v63, %v689_v39  ;;  %v1153_v12 = vmax.f32 %v1746_v14, %v1750_v63  ;;  %1771 = vpow2.f32 %v503_v4  ;;  %v295_v39 = vld [vmem:[%s2352_s7 + $0x44] sm:$0x1] }
  0xa2   : > { %v2630_v58 = vpop.eup %1753  ;;  %v834_v49 = vmul.f32 %v1752_v51, %v690_v30  ;;  %v1154_v26 = vmax.f32 %v1748_v7, %v1752_v51  ;;  %1773 = vrcp.f32 %v1305_v52  ;;  %v296_v52 = vld [vmem:[%s2352_s7 + $0x45] sm:$0x1] }
  0xa3   : > { %v2632_v59 = vpop.eup %1755  ;;  %v961_v3 = vmax.f32 %v817_v48, %v833_v54  ;;  %v1217_v19 = vmax.f32 %v1153_v12, %v2630_v58  ;;  %1775 = vpow2.f32 %v505_v44  ;;  %v2644_v43 = vmul.f32 %v2630_v58, %v705_v0 }
  0xa4   : > { %v1758_v15 = vpop.eup %1757  ;;  %v1218_v9 = vmax.f32 %v1154_v26, %v2632_v59  ;;  %v962_v20 = vmax.f32 %v818_v37, %v834_v49  ;;  %v477_v37 = vmul.f32 1.442695, %v280_v22  ;;  %v724_v49 = vld [vmem:[%s2345_s28 + $0x41] sm:$0x1]  ;;  %1777 = vpow2.f32 %v475_v27  ;;  %v281_v27 = vld [vmem:[%s2352_s7 + $0x36] sm:$0x1] }
  0xa5   : > { %v1760_v14 = vpop.eup %1759  ;;  %v1342_v4 = vmul.f32 %v1758_v15, %v1112_v42  ;;  %v2651_v42 = vmul.f32 %v2632_v59, %v706_v1  ;;  %v1025_v12 = vmax.f32 %v961_v3, %v2644_v43  ;;  %v507_v26 = vmul.f32 1.442695, %v295_v39 }
  0xa6   : > { %v1762_v7 = vpop.eup %1761  ;;  %v1274_v30 = vmax.f32 %v1217_v19, %v1218_v9  ;;  %v851_v63 = vmul.f32 %v1760_v14, %v707_v2  ;;  %v1155_v48 = vmax.f32 %v2382_v50, %v1760_v14  ;;  %v723_v50 = vld [vmem:[%s2345_s28 + $0x40] sm:$0x1]  ;;  %v709_v19 = vld [vmem:[%s2345_s28 + $0x32] sm:$0x1]  ;;  %v710_v9 = vld [vmem:[%s2345_s28 + $0x33] sm:$0x1] }
  0xa7   : > { %v2647_v51 = vpop.eup %1763  ;;  %1400 = vst [vmem:[%s2476_s8 + $0x5] sm:$0x1] %v1342_v4  ;;  %v852_v45 = vmul.f32 %v1762_v7, %v708_v8  ;;  %v1156_v44 = vmax.f32 %v2386_v55, %v1762_v7  ;;  %v1026_v1 = vmax.f32 %v962_v20, %v2651_v42  ;;  %v509_v22 = vmul.f32 1.442695, %v296_v52 }
  0xa8   : > { %v2655_v54 = vpop.eup %1765  ;;  %v1306_v46 = vmax.f32 %v1274_v30, %v2609_v23  ;;  %v963_v2 = vmax.f32 %v2389_v56, %v851_v63  ;;  %v1219_v55 = vmax.f32 %v1155_v48, %v2647_v51  ;;  %v1113_v23 = vmax.f32 %v1081_v28, %v2589_v29  ;;  %v297_v30 = vld [vmem:[%s2352_s7 + $0x46] sm:$0x1] }
  0xa9   : > { %v1768_v0 = vpop.eup %1767  ;;  %v1220_v15 = vmax.f32 %v1156_v44, %v2655_v54  ;;  %v964_v8 = vmax.f32 %v2394_v61, %v852_v45  ;;  %v2671_v14 = vmul.f32 %v2647_v51, %v723_v50  ;;  %v2674_v56 = vmul.f32 %v2655_v54, %v724_v49  ;;  %v282_v61 = vld [vmem:[%s2352_s7 + $0x37] sm:$0x1]  ;;  %v725_v50 = vld [vmem:[%s2345_s28 + $0x42] sm:$0x1] }
  0xaa   : > { %v1770_v3 = vpop.eup %1769  ;;  %1779 = vrcp.f32 %v1306_v46  ;;  %v1157_v20 = vmax.f32 %v2409_v17, %v1768_v0  ;;  %v853_v7 = vmul.f32 %v1768_v0, %v709_v19  ;;  %v1082_v48 = vmax.f32 %v1025_v12, %v1026_v1  ;;  %v726_v12 = vld [vmem:[%s2345_s28 + $0x43] sm:$0x1] }
  0xab   : > { %v1275_v4 = vmax.f32 %v1219_v55, %v1220_v15  ;;  %v2677_v39 = vpop.eup %1771  ;;  %v854_v29 = vmul.f32 %v1770_v3, %v710_v9  ;;  %v1158_v28 = vmax.f32 %v2413_v24, %v1770_v3  ;;  %1781 = vpow2.f32 %v477_v37  ;;  %v298_v37 = vld [vmem:[%s2352_s7 + $0x47] sm:$0x1]  ;;  %v711_v9 = vld [vmem:[%s2345_s28 + $0x34] sm:$0x1]  ;;  %v284_v3 = vld [vmem:[%s2352_s7 + $0x39] sm:$0x1] }
  0xac   : > { %v1774_v63 = vpop.eup %1773  ;;  %v1027_v45 = vmax.f32 %v963_v2, %v2671_v14  ;;  %v479_v52 = vmul.f32 1.442695, %v281_v27  ;;  %v2684_v17 = vmax.f32 %v964_v8, %v2674_v56  ;;  %v1221_v24 = vmax.f32 %v1157_v20, %v2677_v39  ;;  %v299_v20 = vld [vmem:[%s2352_s7 + $0x48] sm:$0x1] }
  0xad   : > { %v1307_v44 = vmax.f32 %v1275_v4, %v1219_v55  ;;  %v1344_v46 = vmul.f32 %v1774_v63, %v1113_v23  ;;  %1783 = vpow2.f32 %v507_v26  ;;  %v2689_v49 = vpop.eup %1775  ;;  %v481_v0 = vmul.f32 1.442695, %v282_v61  ;;  %v283_v26 = vld [vmem:[%s2352_s7 + $0x38] sm:$0x1]  ;;  %v285_v61 = vld [vmem:[%s2352_s7 + $0x3a] sm:$0x1] }
  0xae   : > { %v511_v1 = vmul.f32 1.442695, %v297_v30  ;;  %v965_v2 = vmax.f32 %v2420_v31, %v853_v7  ;;  %v966_v55 = vmax.f32 %v2424_v35, %v854_v29  ;;  %v2696_v19 = vmax.f32 %v1158_v28, %v2689_v49  ;;  %v1778_v27 = vpop.eup %1777  ;;  %v300_v7 = vld [vmem:[%s2352_s7 + $0x49] sm:$0x1] }
  0xaf   : > { %1785 = vrcp.f32 %v1307_v44  ;;  %1401 = vst [vmem:[%s2476_s8 + $0x6] sm:$0x1] %v1344_v46  ;;  %v1114_v23 = vmax.f32 %v1082_v48, %v2626_v47  ;;  %v513_v8 = vmul.f32 1.442695, %v298_v37  ;;  %v1083_v4 = vmax.f32 %v1027_v45, %v2684_v17  ;;  %v286_v37 = vld [vmem:[%s2352_s7 + $0x3b] sm:$0x1] }
  0xb0   : > { %1787 = vpow2.f32 %v509_v22  ;;  %v2704_v31 = vmul.f32 %v2677_v39, %v725_v50  ;;  %v2707_v35 = vmul.f32 %v2689_v49, %v726_v12  ;;  %v1276_v22 = vmax.f32 %v1221_v24, %v2696_v19  ;;  %v301_v12 = vld [vmem:[%s2352_s7 + $0x4a] sm:$0x1] }
  0xb1   : > { %1789 = vpow2.f32 %v479_v52  ;;  %v855_v29 = vmul.f32 %v1778_v27, %v711_v9  ;;  %v483_v47 = vmul.f32 1.442695, %v283_v26  ;;  %v485_v28 = vmul.f32 1.442695, %v284_v3  ;;  %v712_v52 = vld [vmem:[%s2345_s28 + $0x35] sm:$0x1] }
  0xb2   : > { %1791 = vpow2.f32 %v481_v0  ;;  %v1029_v63 = vmax.f32 %v965_v2, %v2704_v31  ;;  %v2715_v48 = vmax.f32 %v966_v55, %v2707_v35  ;;  %v1308_v44 = vmax.f32 %v1276_v22, %v1220_v15  ;;  %v727_v2 = vld [vmem:[%s2345_s28 + $0x44] sm:$0x1]  ;;  %v302_v3 = vld [vmem:[%s2352_s7 + $0x4b] sm:$0x1] }
  0xb3   : > { %1793 = vpow2.f32 %v511_v1  ;;  %v1159_v50 = vmax.f32 %v2436_v53, %v1778_v27  ;;  %v515_v24 = vmul.f32 1.442695, %v299_v20  ;;  %v1115_v9 = vmax.f32 %v1083_v4, %v1027_v45  ;;  %v728_v45 = vld [vmem:[%s2345_s28 + $0x45] sm:$0x1] }
  0xb4   : > { %v1780_v30 = vpop.eup %1779  ;;  %1795 = vpow2.f32 %v513_v8  ;;  %v517_v55 = vmul.f32 1.442695, %v300_v7  ;;  %v487_v26 = vmul.f32 1.442695, %v285_v61  ;;  %v967_v1 = vmax.f32 %v2446_v5, %v855_v29  ;;  %v713_v29 = vld [vmem:[%s2345_s28 + $0x36] sm:$0x1] }
  0xb5   : > { %v1346_v46 = vmul.f32 %v1780_v30, %v1114_v23  ;;  %v1782_v0 = vpop.eup %1781  ;;  %1797 = vrcp.f32 %v1308_v44  ;;  %v287_v23 = vld [vmem:[%s2352_s7 + $0x3c] sm:$0x1]  ;;  %v1084_v27 = vmax.f32 %v1029_v63, %v2715_v48  ;;  %v489_v4 = vmul.f32 1.442695, %v286_v37  ;;  %v303_v63 = vld [vmem:[%s2352_s7 + $0x4c] sm:$0x1] }
  0xb6   : > { %v856_v15 = vmul.f32 %v1782_v0, %v712_v52  ;;  %v1160_v53 = vmax.f32 %v2440_v62, %v1782_v0  ;;  %1799 = vpow2.f32 %v483_v47  ;;  %v519_v22 = vmul.f32 1.442695, %v301_v12  ;;  %v288_v47 = vld [vmem:[%s2352_s7 + $0x3d] sm:$0x1]  ;;  %v304_v37 = vld [vmem:[%s2352_s7 + $0x4d] sm:$0x1] }
  0xb7   : > { %1402 = vst [vmem:[%s2476_s8 + $0x7] sm:$0x1] %v1346_v46  ;;  %v2727_v8 = vpop.eup %1783  ;;  %1801 = vpow2.f32 %v485_v28  ;;  %v521_v28 = vmul.f32 1.442695, %v302_v3  ;;  %v491_v44 = vmul.f32 1.442695, %v287_v23 }
  0xb8   : > { %v2732_v7 = vmul.f32 %v2727_v8, %v727_v2  ;;  %v968_v62 = vmax.f32 %v2453_v11, %v856_v15  ;;  %v1223_v5 = vmax.f32 %v1159_v50, %v2727_v8  ;;  %1803 = vpow2.f32 %v515_v24  ;;  %v714_v24 = vld [vmem:[%s2345_s28 + $0x37] sm:$0x1]  ;;  %v289_v3 = vld [vmem:[%s2352_s7 + $0x3e] sm:$0x1]  ;;  %v729_v23 = vld [vmem:[%s2345_s28 + $0x46] sm:$0x1] }
  0xb9   : > { %v1786_v20 = vpop.eup %1785  ;;  %1805 = vpow2.f32 %v517_v55  ;;  %v1116_v55 = vmax.f32 %v1084_v27, %v2684_v17  ;;  %v2764_v17 = vmul.f32 1.442695, %v304_v37 }
  0xba   : > { %v2738_v61 = vpop.eup %1787  ;;  %v1348_v30 = vmul.f32 %v1786_v20, %v1115_v9  ;;  %v2745_v11 = vmax.f32 %v967_v1, %v2732_v7  ;;  %1807 = vpow2.f32 %v487_v26  ;;  %v493_v9 = vmul.f32 1.442695, %v288_v47  ;;  %v716_v47 = vld [vmem:[%s2345_s28 + $0x39] sm:$0x1] }
  0xbb   : > { %v1790_v52 = vpop.eup %1789  ;;  %v2742_v46 = vmul.f32 %v2738_v61, %v728_v45  ;;  %v1224_v50 = vmax.f32 %v1160_v53, %v2738_v61  ;;  %1809 = vpow2.f32 %v489_v4  ;;  %v2756_v53 = vmul.f32 1.442695, %v303_v63  ;;  %v730_v45 = vld [vmem:[%s2345_s28 + $0x47] sm:$0x1] }
  0xbc   : > { %1403 = vst [vmem:[%s2476_s8 + $0x8] sm:$0x1] %v1348_v30  ;;  %v857_v12 = vmul.f32 %v1790_v52, %v713_v29  ;;  %v1161_v0 = vmax.f32 %v2490_v10, %v1790_v52  ;;  %v1792_v2 = vpop.eup %1791  ;;  %1811 = vpow2.f32 %v519_v22  ;;  %v715_v29 = vld [vmem:[%s2345_s28 + $0x38] sm:$0x1]  ;;  %v290_v52 = vld [vmem:[%s2352_s7 + $0x3f] sm:$0x1] }
  0xbd   : > { %v2754_v15 = vmax.f32 %v968_v62, %v2742_v46  ;;  %v1277_v1 = vmax.f32 %v1223_v5, %v1224_v50  ;;  %v2759_v26 = vpop.eup %1793  ;;  %v858_v10 = vmul.f32 %v1792_v2, %v714_v24  ;;  %v1162_v4 = vmax.f32 %v2495_v16, %v1792_v2  ;;  %v305_v24 = vld [vmem:[%s2352_s7 + $0x4e] sm:$0x1] }
  0xbe   : > { %v2766_v27 = vpop.eup %1795  ;;  %v1225_v5 = vmax.f32 %v1161_v0, %v2759_v26  ;;  %1813 = vpow2.f32 %v521_v28  ;;  %v969_v63 = vmax.f32 %v2502_v25, %v857_v12  ;;  %v2782_v0 = vmul.f32 %v2759_v26, %v729_v23 }
  0xbf   : > { %3376 = vst [vmem:[#allocation11_spill] sm:$0xff] %v2766_v27  ;;  %v1085_v20 = vmax.f32 %v2745_v11, %v2754_v15  ;;  %v1309_v62 = vmax.f32 %v1277_v1, %v2696_v19  ;;  %v1798_v30 = vpop.eup %1797  ;;  %v970_v16 = vmax.f32 %v2510_v32, %v858_v10  ;;  %v1226_v22 = vmax.f32 %v1162_v4, %v2766_v27  ;;  %v731_v32 = vld [vmem:[%s2345_s28 + $0x48] sm:$0x1]  ;;  %v306_v4 = vld [vmem:[%s2352_s7 + $0x4f] sm:$0x1] }
  0xc0   : > { %v2779_v11 = vmul.f32 1.442695, %v289_v3  ;;  %v1800_v19 = vpop.eup %1799  ;;  %v1350_v37 = vmul.f32 %v1798_v30, %v1116_v55  ;;  %v2785_v28 = vmul.f32 %v2766_v27, %v730_v45  ;;  %v717_v3 = vld [vmem:[%s2345_s28 + $0x3a] sm:$0x1]  ;;  %v2795_v45 = vmul.f32 1.442695, %v305_v24 }
  0xc1   : > { %1815 = vrcp.f32 %v1309_v62  ;;  %v1802_v25 = vpop.eup %1801  ;;  %v1278_v12 = vmax.f32 %v1225_v5, %v1226_v22  ;;  %v859_v2 = vmul.f32 %v1800_v19, %v715_v29  ;;  %v1163_v1 = vmax.f32 %v2528_v60, %v1800_v19  ;;  %v732_v19 = vld [vmem:[%s2345_s28 + $0x49] sm:$0x1] }
  0xc2   : > { %1817 = vpow2.f32 %v491_v44  ;;  %v2790_v10 = vpop.eup %1803  ;;  %1404 = vst [vmem:[%s2476_s8 + $0x9] sm:$0x1] %v1350_v37  ;;  %v860_v55 = vmul.f32 %v1802_v25, %v716_v47  ;;  %v1164_v23 = vmax.f32 %v2533_v6, %v1802_v25  ;;  %v497_v62 = vmul.f32 1.442695, %v290_v52  ;;  %v718_v44 = vld [vmem:[%s2345_s28 + $0x3b] sm:$0x1] }
  0xc3   : > { %v2797_v30 = vpop.eup %1805  ;;  %v1033_v5 = vmax.f32 %v969_v63, %v2782_v0  ;;  %v2801_v29 = vmax.f32 %v970_v16, %v2785_v28  ;;  %v1310_v60 = vmax.f32 %v1278_v12, %v1224_v50  ;;  %1819 = vpow2.f32 %v493_v9 }
  0xc4   : > { %v1808_v27 = vpop.eup %1807  ;;  %v971_v47 = vmax.f32 %v2546_v21, %v859_v2  ;;  %v972_v6 = vmax.f32 %v2552_v36, %v860_v55  ;;  %v1227_v52 = vmax.f32 %v1163_v1, %v2790_v10  ;;  %v1228_v24 = vmax.f32 %v1164_v23, %v2797_v30  ;;  %v733_v55 = vld [vmem:[%s2345_s28 + $0x4a] sm:$0x1]  ;;  %v308_v23 = vld [vmem:[%s2352_s7 + $0x51] sm:$0x1] }
  0xc5   : > { %v1810_v37 = vpop.eup %1809  ;;  %1821 = vrcp.f32 %v1310_v60  ;;  %v2810_v63 = vmul.f32 %v2790_v10, %v731_v32  ;;  %v861_v50 = vmul.f32 %v1808_v27, %v717_v3  ;;  %v529_v16 = vmul.f32 1.442695, %v306_v4  ;;  %v307_v3 = vld [vmem:[%s2352_s7 + $0x50] sm:$0x1] }
  0xc6   : > { %v2813_v9 = vmul.f32 %v2797_v30, %v732_v19  ;;  %v1279_v21 = vmax.f32 %v1227_v52, %v1228_v24  ;;  %v862_v25 = vmul.f32 %v1810_v37, %v718_v44  ;;  %v1165_v36 = vmax.f32 %v2554_v34, %v1808_v27  ;;  %v2816_v12 = vpop.eup %1811  ;;  %v734_v19 = vld [vmem:[%s2345_s28 + $0x4b] sm:$0x1] }
  0xc7   : > { %v1117_v2 = vmax.f32 %v1085_v20, %v2715_v48  ;;  %v1086_v1 = vmax.f32 %v1033_v5, %v2801_v29  ;;  %v1166_v32 = vmax.f32 %v2568_v40, %v1810_v37  ;;  %1823 = vpow2.f32 %v2756_v53 }
  0xc8   : > { %v2825_v4 = vpop.eup %1813  ;;  %v1035_v60 = vmax.f32 %v971_v47, %v2810_v63  ;;  %v2829_v34 = vmax.f32 %v972_v6, %v2813_v9  ;;  %v1311_v27 = vmax.f32 %v1279_v21, %v1226_v22  ;;  %v973_v48 = vmax.f32 %v2576_v41, %v861_v50  ;;  %v719_v22 = vld [vmem:[%s2345_s28 + $0x3c] sm:$0x1]  ;;  %v323_v50 = vld [vmem:[%s2352_s7 + $0x60] sm:$0x1] }
  0xc9   : > { %v974_v20 = vmax.f32 %v2579_v18, %v862_v25  ;;  %v1229_v40 = vmax.f32 %v1165_v36, %v2816_v12  ;;  %v2836_v53 = vmax.f32 %v1166_v32, %v2825_v4  ;;  %1825 = vpow2.f32 %v2764_v17  ;;  %v720_v17 = vld [vmem:[%s2345_s28 + $0x3d] sm:$0x1]  ;;  %v309_v32 = vld [vmem:[%s2352_s7 + $0x52] sm:$0x1] }
  0xca   : > { %1827 = vrcp.f32 %v1311_v27  ;;  %v2840_v44 = vmul.f32 %v2816_v12, %v733_v55  ;;  %v531_v47 = vmul.f32 1.442695, %v307_v3  ;;  %v533_v41 = vmul.f32 1.442695, %v308_v23  ;;  %v324_v55 = vld [vmem:[%s2352_s7 + $0x61] sm:$0x1] }
  0xcb   : > { %v1816_v5 = vpop.eup %1815  ;;  %v2844_v52 = vmul.f32 %v2825_v4, %v734_v19  ;;  %v1280_v37 = vmax.f32 %v1229_v40, %v2836_v53  ;;  %1829 = vpow2.f32 %v2779_v11  ;;  %v1118_v21 = vmax.f32 %v1086_v1, %v2754_v15  ;;  %v310_v11 = vld [vmem:[%s2352_s7 + $0x53] sm:$0x1] }
  0xcc   : > { %v1818_v18 = vpop.eup %1817  ;;  %v1352_v6 = vmul.f32 %v1816_v5, %v1117_v2  ;;  %v1087_v25 = vmax.f32 %v1035_v60, %v2829_v34  ;;  %v1037_v36 = vmax.f32 %v973_v48, %v2840_v44  ;;  %1831 = vpow2.f32 %v497_v62 }
  0xcd   : > { %v1820_v2 = vpop.eup %1819  ;;  %v2857_v3 = vmax.f32 %v974_v20, %v2844_v52  ;;  %v1312_v23 = vmax.f32 %v1280_v37, %v1228_v24  ;;  %v863_v27 = vmul.f32 %v1818_v18, %v719_v22  ;;  %1833 = vpow2.f32 %v2795_v45  ;;  %v735_v20 = vld [vmem:[%s2345_s28 + $0x4c] sm:$0x1] }
  0xce   : > { %1405 = vst [vmem:[%s2476_s8 + $0xa] sm:$0x1] %v1352_v6  ;;  %v864_v19 = vmul.f32 %v1820_v2, %v720_v17  ;;  %v1167_v15 = vmax.f32 %v2597_v57, %v1818_v18  ;;  %1835 = vpow2.f32 %v529_v16  ;;  %v563_v1 = vmul.f32 1.442695, %v323_v50  ;;  %v736_v16 = vld [vmem:[%s2345_s28 + $0x4d] sm:$0x1] }
  0xcf   : > { %v1822_v62 = vpop.eup %1821  ;;  %1837 = vrcp.f32 %v1312_v23  ;;  %v565_v60 = vmul.f32 1.442695, %v324_v55  ;;  %v535_v48 = vmul.f32 1.442695, %v309_v32  ;;  %v1168_v24 = vmax.f32 %v2605_v13, %v1820_v2  ;;  %v325_v6 = vld [vmem:[%s2352_s7 + $0x62] sm:$0x1] }
  0xd0   : > { %v1354_v40 = vmul.f32 %v1822_v62, %v1118_v21  ;;  %1839 = vpow2.f32 %v531_v47  ;;  %v537_v45 = vmul.f32 1.442695, %v310_v11  ;;  %v1119_v22 = vmax.f32 %v1087_v25, %v2801_v29  ;;  %v721_v29 = vld [vmem:[%s2345_s28 + $0x3e] sm:$0x1]  ;;  %v326_v2 = vld [vmem:[%s2352_s7 + $0x63] sm:$0x1] }
  0xd1   : > { %v2864_v5 = vpop.eup %1823  ;;  %v1088_v57 = vmax.f32 %v1037_v36, %v2857_v3  ;;  %v975_v18 = vmax.f32 %v2613_v33, %v863_v27  ;;  %1841 = vpow2.f32 %v533_v41  ;;  %v976_v37 = vmax.f32 %v2616_v38, %v864_v19  ;;  %v722_v41 = vld [vmem:[%s2345_s28 + $0x3f] sm:$0x1] }
  0xd2   : > { %1406 = vst [vmem:[%s2476_s8 + $0xb] sm:$0x1] %v1354_v40  ;;  %v1231_v13 = vmax.f32 %v1167_v15, %v2864_v5  ;;  %1843 = vpow2.f32 %v563_v1  ;;  %v2877_v17 = vmul.f32 %v2864_v5, %v735_v20  ;;  %v567_v38 = vmul.f32 1.442695, %v325_v6  ;;  %v737_v40 = vld [vmem:[%s2345_s28 + $0x4e] sm:$0x1] }
  0xd3   : > { %v2874_v47 = vpop.eup %1825  ;;  %1845 = vpow2.f32 %v565_v60  ;;  %v1120_v55 = vmax.f32 %v1088_v57, %v2829_v34  ;;  %v739_v20 = vld [vmem:[%s2345_s28 + $0x50] sm:$0x1]  ;;  %v738_v57 = vld [vmem:[%s2345_s28 + $0x4f] sm:$0x1] }
  0xd4   : > { %v1828_v50 = vpop.eup %1827  ;;  %v2881_v21 = vmul.f32 %v2874_v47, %v736_v16  ;;  %v1232_v33 = vmax.f32 %v1168_v24, %v2874_v47  ;;  %1847 = vpow2.f32 %v535_v48  ;;  %v1039_v32 = vmax.f32 %v975_v18, %v2877_v17  ;;  %v740_v18 = vld [vmem:[%s2345_s28 + $0x51] sm:$0x1] }
  0xd5   : > { %v1830_v25 = vpop.eup %1829  ;;  %v1356_v36 = vmul.f32 %v1828_v50, %v1119_v22  ;;  %1849 = vpow2.f32 %v537_v45  ;;  %v569_v24 = vmul.f32 1.442695, %v326_v2 }
  0xd6   : > { %v1832_v23 = vpop.eup %1831  ;;  %v2889_v27 = vmax.f32 %v976_v37, %v2881_v21  ;;  %v1281_v11 = vmax.f32 %v1231_v13, %v1232_v33  ;;  %v865_v19 = vmul.f32 %v1830_v25, %v721_v29  ;;  %v1169_v15 = vmax.f32 %v2630_v58, %v1830_v25  ;;  %v311_v13 = vld [vmem:[%s2352_s7 + $0x54] sm:$0x1] }
  0xd7   : > { %v2892_v1 = vpop.eup %1833  ;;  %1407 = vst [vmem:[%s2476_s8 + $0xc] sm:$0x1] %v1356_v36  ;;  %v866_v62 = vmul.f32 %v1832_v23, %v722_v41  ;;  %v1170_v34 = vmax.f32 %v2632_v59, %v1832_v23  ;;  %1851 = vpow2.f32 %v567_v38 }
  0xd8   : > { %v2896_v60 = vpop.eup %1835  ;;  %v1313_v48 = vmax.f32 %v1281_v11, %v2836_v53  ;;  %v1089_v22 = vmax.f32 %v1039_v32, %v2889_v27  ;;  %v1233_v58 = vmax.f32 %v1169_v15, %v2892_v1  ;;  %v977_v53 = vmax.f32 %v2644_v43, %v865_v19  ;;  %v312_v32 = vld [vmem:[%s2352_s7 + $0x55] sm:$0x1]  ;;  %v327_v11 = vld [vmem:[%s2352_s7 + $0x64] sm:$0x1] }
  0xd9   : > { %v1838_v45 = vpop.eup %1837  ;;  %v1234_v16 = vmax.f32 %v1170_v34, %v2896_v60  ;;  %v978_v37 = vmax.f32 %v2651_v42, %v866_v62  ;;  %v2910_v50 = vmul.f32 %v2892_v1, %v737_v40  ;;  %v539_v19 = vmul.f32 1.442695, %v311_v13  ;;  %v755_v34 = vld [vmem:[%s2345_s28 + $0x60] sm:$0x1]  ;;  %v314_v13 = vld [vmem:[%s2352_s7 + $0x57] sm:$0x1] }
  0xda   : > { %v1840_v59 = vpop.eup %1839  ;;  %v1358_v6 = vmul.f32 %v1838_v45, %v1120_v55  ;;  %1853 = vrcp.f32 %v1313_v48  ;;  %v2917_v55 = vmul.f32 %v2896_v60, %v738_v57  ;;  %v756_v48 = vld [vmem:[%s2345_s28 + $0x61] sm:$0x1]  ;;  %v328_v45 = vld [vmem:[%s2352_s7 + $0x65] sm:$0x1]  ;;  %v541_v57 = vmul.f32 1.442695, %v312_v32 }
  0xdb   : > { %v1842_v29 = vpop.eup %1841  ;;  %v1282_v41 = vmax.f32 %v1233_v58, %v1234_v16  ;;  %v883_v25 = vmul.f32 %v1840_v59, %v739_v20  ;;  %v1171_v36 = vmax.f32 %v2647_v51, %v1840_v59  ;;  %1855 = vpow2.f32 %v569_v24  ;;  %v313_v58 = vld [vmem:[%s2352_s7 + $0x56] sm:$0x1] }
  0xdc   : > { %v2913_v38 = vpop.eup %1843  ;;  %1408 = vst [vmem:[%s2476_s8 + $0xd] sm:$0x1] %v1358_v6  ;;  %v884_v43 = vmul.f32 %v1842_v29, %v740_v18  ;;  %v1172_v42 = vmax.f32 %v2655_v54, %v1842_v29  ;;  %v1041_v15 = vmax.f32 %v977_v53, %v2910_v50  ;;  %v1042_v62 = vmax.f32 %v978_v37, %v2917_v55  ;;  %v741_v37 = vld [vmem:[%s2345_s28 + $0x52] sm:$0x1] }
  0xdd   : > { %v2921_v2 = vpop.eup %1845  ;;  %v1314_v23 = vmax.f32 %v1282_v41, %v1232_v33  ;;  %v1235_v54 = vmax.f32 %v1171_v36, %v2913_v38  ;;  %v979_v33 = vmax.f32 %v2671_v14, %v883_v25  ;;  %v1121_v16 = vmax.f32 %v1089_v22, %v2857_v3  ;;  %v742_v14 = vld [vmem:[%s2345_s28 + $0x53] sm:$0x1]  ;;  %v329_v22 = vld [vmem:[%s2352_s7 + $0x66] sm:$0x1] }
  0xde   : > { %v1848_v51 = vpop.eup %1847  ;;  %v2930_v40 = vmax.f32 %v1172_v42, %v2921_v2  ;;  %v980_v24 = vmax.f32 %v2674_v56, %v884_v43  ;;  %v571_v59 = vmul.f32 1.442695, %v327_v11  ;;  %v2939_v6 = vmul.f32 %v2913_v38, %v755_v34 }
  0xdf   : > { %v1850_v20 = vpop.eup %1849  ;;  %1857 = vrcp.f32 %v1314_v23  ;;  %v2942_v53 = vmul.f32 %v2921_v2, %v756_v48  ;;  %v1173_v56 = vmax.f32 %v2677_v39, %v1848_v51  ;;  %v1090_v29 = vmax.f32 %v1041_v15, %v1042_v62  ;;  %v330_v39 = vld [vmem:[%s2352_s7 + $0x67] sm:$0x1]  ;;  %v315_v62 = vld [vmem:[%s2352_s7 + $0x58] sm:$0x1] }
  0xe0   : > { %v1283_v18 = vmax.f32 %v1235_v54, %v2930_v40  ;;  %1859 = vpow2.f32 %v539_v19  ;;  %v573_v3 = vmul.f32 1.442695, %v328_v45  ;;  %v543_v25 = vmul.f32 1.442695, %v313_v58  ;;  %v757_v58 = vld [vmem:[%s2345_s28 + $0x62] sm:$0x1] }
  0xe1   : > { %v2949_v36 = vpop.eup %1851  ;;  %v1043_v43 = vmax.f32 %v979_v33, %v2939_v6  ;;  %v2953_v42 = vmax.f32 %v980_v24, %v2942_v53  ;;  %v1174_v32 = vmax.f32 %v2689_v49, %v1850_v20  ;;  %1861 = vpow2.f32 %v541_v57  ;;  %v316_v33 = vld [vmem:[%s2352_s7 + $0x59] sm:$0x1]  ;;  %v331_v57 = vld [vmem:[%s2352_s7 + $0x68] sm:$0x1] }
  0xe2   : > { %v1315_v41 = vmax.f32 %v1283_v18, %v1235_v54  ;;  %v885_v11 = vmul.f32 %v1848_v51, %v741_v37  ;;  %v886_v19 = vmul.f32 %v1850_v20, %v742_v14  ;;  %v545_v15 = vmul.f32 1.442695, %v314_v13  ;;  %v332_v51 = vld [vmem:[%s2352_s7 + $0x69] sm:$0x1]  ;;  %v758_v18 = vld [vmem:[%s2345_s28 + $0x63] sm:$0x1] }
  0xe3   : > { %v1237_v48 = vmax.f32 %v1173_v56, %v2949_v36  ;;  %v575_v54 = vmul.f32 1.442695, %v329_v22  ;;  %v1122_v24 = vmax.f32 %v1090_v29, %v2889_v27  ;;  %v577_v45 = vmul.f32 1.442695, %v330_v39  ;;  %v317_v56 = vld [vmem:[%s2352_s7 + $0x5a] sm:$0x1] }
  0xe4   : > { %v1854_v23 = vpop.eup %1853  ;;  %1863 = vrcp.f32 %v1315_v41  ;;  %v1091_v20 = vmax.f32 %v1043_v43, %v2953_v42  ;;  %v981_v37 = vmax.f32 %v2704_v31, %v885_v11  ;;  %v982_v27 = vmax.f32 %v2707_v35, %v886_v19  ;;  %v743_v35 = vld [vmem:[%s2345_s28 + $0x54] sm:$0x1]  ;;  %v744_v19 = vld [vmem:[%s2345_s28 + $0x55] sm:$0x1] }
  0xe5   : > { %v1360_v34 = vmul.f32 %v1854_v23, %v1121_v16  ;;  %1865 = vpow2.f32 %v571_v59  ;;  %v2960_v49 = vpop.eup %1855  ;;  %v547_v59 = vmul.f32 1.442695, %v315_v62  ;;  %v549_v14 = vmul.f32 1.442695, %v316_v33  ;;  %v334_v33 = vld [vmem:[%s2352_s7 + $0x6b] sm:$0x1] }
  0xe6   : > { %1867 = vpow2.f32 %v573_v3  ;;  %v2970_v16 = vmax.f32 %v1174_v32, %v2960_v49  ;;  %v579_v41 = vmul.f32 1.442695, %v331_v57  ;;  %v581_v3 = vmul.f32 1.442695, %v332_v51  ;;  %v318_v32 = vld [vmem:[%s2352_s7 + $0x5b] sm:$0x1] }
  0xe7   : > { %1409 = vst [vmem:[%s2476_s8 + $0xe] sm:$0x1] %v1360_v34  ;;  %1869 = vpow2.f32 %v543_v25  ;;  %v2977_v25 = vmul.f32 %v2949_v36, %v757_v58  ;;  %v2980_v31 = vmul.f32 %v2960_v49, %v758_v18  ;;  %v1123_v23 = vmax.f32 %v1091_v20, %v1043_v43  ;;  %v319_v43 = vld [vmem:[%s2352_s7 + $0x5c] sm:$0x1]  ;;  %v320_v57 = vld [vmem:[%s2352_s7 + $0x5d] sm:$0x1] }
  0xe8   : > { %1871 = vpow2.f32 %v545_v15  ;;  %v1284_v29 = vmax.f32 %v1237_v48, %v2970_v16  ;;  %v333_v15 = vld [vmem:[%s2352_s7 + $0x6a] sm:$0x1]  ;;  %v551_v62 = vmul.f32 1.442695, %v317_v56  ;;  %v759_v20 = vld [vmem:[%s2345_s28 + $0x64] sm:$0x1] }
  0xe9   : > { %v1858_v13 = vpop.eup %1857  ;;  %1873 = vpow2.f32 %v575_v54  ;;  %v1045_v34 = vmax.f32 %v981_v37, %v2977_v25  ;;  %v2990_v48 = vmax.f32 %v982_v27, %v2980_v31  ;;  %v745_v27 = vld [vmem:[%s2345_s28 + $0x56] sm:$0x1]  ;;  %v3001_v56 = vmul.f32 1.442695, %v319_v43 }
  0xea   : > { %v1362_v22 = vmul.f32 %v1858_v13, %v1122_v24  ;;  %1875 = vpow2.f32 %v577_v45  ;;  %v1860_v39 = vpop.eup %1859  ;;  %v1316_v11 = vmax.f32 %v1284_v29, %v2930_v40  ;;  %v553_v45 = vmul.f32 1.442695, %v318_v32 }
  0xeb   : > { %1877 = vpow2.f32 %v547_v59  ;;  %v1175_v54 = vmax.f32 %v2727_v8, %v1860_v39  ;;  %v1862_v24 = vpop.eup %1861  ;;  %v887_v40 = vmul.f32 %v1860_v39, %v743_v35  ;;  %v583_v59 = vmul.f32 1.442695, %v333_v15 }
  0xec   : > { %1410 = vst [vmem:[%s2476_s8 + $0xf] sm:$0x1] %v1362_v22  ;;  %1879 = vpow2.f32 %v549_v14  ;;  %v888_v58 = vmul.f32 %v1862_v24, %v744_v19  ;;  %v1176_v18 = vmax.f32 %v2738_v61, %v1862_v24  ;;  %v585_v14 = vmul.f32 1.442695, %v334_v33  ;;  %v760_v22 = vld [vmem:[%s2345_s28 + $0x65] sm:$0x1] }
  0xed   : > { %1881 = vrcp.f32 %v1316_v11  ;;  %v1092_v29 = vmax.f32 %v1045_v34, %v2990_v48  ;;  %v746_v61 = vld [vmem:[%s2345_s28 + $0x57] sm:$0x1]  ;;  %v335_v11 = vld [vmem:[%s2352_s7 + $0x6c] sm:$0x1]  ;;  %v761_v33 = vld [vmem:[%s2345_s28 + $0x66] sm:$0x1] }
  0xee   : > { %v1864_v51 = vpop.eup %1863  ;;  %1883 = vpow2.f32 %v579_v41  ;;  %v3009_v41 = vmul.f32 1.442695, %v320_v57  ;;  %v984_v39 = vmax.f32 %v2742_v46, %v888_v58  ;;  %v3377_v24 = vld [vmem:[#allocation11_spill] sm:$0xff]  ;;  %v748_v58 = vld [vmem:[%s2345_s28 + $0x59] sm:$0x1] }
  0xef   : > { %v2998_v8 = vpop.eup %1865  ;;  %v1364_v37 = vmul.f32 %v1864_v51, %v1123_v23  ;;  %1885 = vpow2.f32 %v581_v3  ;;  %v983_v3 = vmax.f32 %v2732_v7, %v887_v40  ;;  %v1124_v51 = vmax.f32 %v1092_v29, %v2953_v42 }
  0xf0   : > { %v3003_v13 = vpop.eup %1867  ;;  %v1239_v35 = vmax.f32 %v1175_v54, %v2998_v8  ;;  %1887 = vpow2.f32 %v551_v62  ;;  %v3017_v15 = vmul.f32 %v2998_v8, %v759_v20 }
  0xf1   : > { %v1870_v32 = vpop.eup %1869  ;;  %1411 = vst [vmem:[%s2476_s8 + $0x10] sm:$0x1] %v1364_v37  ;;  %v1240_v23 = vmax.f32 %v1176_v18, %v3003_v13  ;;  %1889 = vpow2.f32 %v553_v45  ;;  %v3023_v7 = vmul.f32 %v3003_v13, %v760_v22  ;;  %v336_v45 = vld [vmem:[%s2352_s7 + $0x6d] sm:$0x1]  ;;  %v3034_v18 = vmul.f32 1.442695, %v335_v11 }
  0xf2   : > { %v1872_v19 = vpop.eup %1871  ;;  %v889_v62 = vmul.f32 %v1870_v32, %v745_v27  ;;  %v1177_v34 = vmax.f32 %v2759_v26, %v1870_v32  ;;  %1891 = vpow2.f32 %v583_v59  ;;  %v747_v26 = vld [vmem:[%s2345_s28 + $0x58] sm:$0x1]  ;;  %v1047_v37 = vmax.f32 %v983_v3, %v3017_v15 }
  0xf3   : > { %v3020_v54 = vpop.eup %1873  ;;  %v1285_v46 = vmax.f32 %v1239_v35, %v1240_v23  ;;  %v890_v43 = vmul.f32 %v1872_v19, %v746_v61  ;;  %v1178_v40 = vmax.f32 %v3377_v24, %v1872_v19  ;;  %1893 = vpow2.f32 %v585_v14  ;;  %v762_v35 = vld [vmem:[%s2345_s28 + $0x67] sm:$0x1]  ;;  %v321_v19 = vld [vmem:[%s2352_s7 + $0x5e] sm:$0x1] }
  0xf4   : > { %v3028_v57 = vpop.eup %1875  ;;  %v1241_v20 = vmax.f32 %v1177_v34, %v3020_v54  ;;  %v3038_v27 = vmax.f32 %v984_v39, %v3023_v7  ;;  %v985_v61 = vmax.f32 %v2782_v0, %v889_v62  ;;  %v589_v11 = vmul.f32 1.442695, %v336_v45 }
  0xf5   : > { %v1878_v59 = vpop.eup %1877  ;;  %v1317_v22 = vmax.f32 %v1285_v46, %v2970_v16  ;;  %v986_v29 = vmax.f32 %v2785_v28, %v890_v43  ;;  %v1242_v32 = vmax.f32 %v1178_v40, %v3028_v57  ;;  %v3048_v39 = vmul.f32 %v3020_v54, %v761_v33  ;;  %v322_v43 = vld [vmem:[%s2352_s7 + $0x5f] sm:$0x1] }
  0xf6   : > { %v1880_v42 = vpop.eup %1879  ;;  %v1179_v14 = vmax.f32 %v2790_v10, %v1878_v59  ;;  %v891_v16 = vmul.f32 %v1878_v59, %v747_v26  ;;  %v3053_v28 = vmul.f32 %v3028_v57, %v762_v35  ;;  %v1093_v33 = vmax.f32 %v1047_v37, %v3038_v27  ;;  %v749_v26 = vld [vmem:[%s2345_s28 + $0x5a] sm:$0x1]  ;;  %v763_v35 = vld [vmem:[%s2345_s28 + $0x68] sm:$0x1] }
  0xf7   : > { %v1882_v3 = vpop.eup %1881  ;;  %1895 = vrcp.f32 %v1317_v22  ;;  %v892_v0 = vmul.f32 %v1880_v42, %v748_v58  ;;  %v1286_v10 = vmax.f32 %v1241_v20, %v1242_v32  ;;  %v1180_v46 = vmax.f32 %v2797_v30, %v1880_v42  ;;  %v750_v58 = vld [vmem:[%s2345_s28 + $0x5b] sm:$0x1]  ;;  %v764_v30 = vld [vmem:[%s2345_s28 + $0x69] sm:$0x1] }
  0xf8   : > { %v3050_v62 = vpop.eup %1883  ;;  %v1366_v34 = vmul.f32 %v1882_v3, %v1124_v51  ;;  %v1049_v40 = vmax.f32 %v985_v61, %v3048_v39  ;;  %v559_v51 = vmul.f32 1.442695, %v321_v19  ;;  %v3066_v22 = vmax.f32 %v986_v29, %v3053_v28 }
  0xf9   : > { %v3057_v24 = vpop.eup %1885  ;;  %v1243_v45 = vmax.f32 %v1179_v14, %v3050_v62  ;;  %v1318_v20 = vmax.f32 %v1286_v10, %v1240_v23  ;;  %1897 = vpow2.f32 %v3001_v56  ;;  %v987_v61 = vmax.f32 %v2810_v63, %v891_v16  ;;  %v337_v16 = vld [vmem:[%s2352_s7 + $0x6e] sm:$0x1] }
  0xfa   : > { %v1888_v59 = vpop.eup %1887  ;;  %1412 = vst [vmem:[%s2476_s8 + $0x11] sm:$0x1] %v1366_v34  ;;  %v1244_v42 = vmax.f32 %v1180_v46, %v3057_v24  ;;  %v988_v14 = vmax.f32 %v2813_v9, %v892_v0  ;;  %v561_v3 = vmul.f32 1.442695, %v322_v43  ;;  %v3078_v56 = vmul.f32 %v3050_v62, %v763_v35  ;;  %v766_v35 = vld [vmem:[%s2345_s28 + $0x6b] sm:$0x1] }
  0xfb   : > { %v1890_v37 = vpop.eup %1889  ;;  %v1181_v19 = vmax.f32 %v2816_v12, %v1888_v59  ;;  %1899 = vrcp.f32 %v1318_v20  ;;  %v893_v29 = vmul.f32 %v1888_v59, %v749_v26  ;;  %v3081_v63 = vmul.f32 %v3057_v24, %v764_v30  ;;  %v338_v26 = vld [vmem:[%s2352_s7 + $0x6f] sm:$0x1] }
  0xfc   : > { %v3075_v34 = vpop.eup %1891  ;;  %v1287_v23 = vmax.f32 %v1243_v45, %v1244_v42  ;;  %v894_v10 = vmul.f32 %v1890_v37, %v750_v58  ;;  %v1182_v9 = vmax.f32 %v2825_v4, %v1890_v37  ;;  %v1125_v46 = vmax.f32 %v1093_v33, %v2990_v48  ;;  %v339_v58 = vld [vmem:[%s2352_s7 + $0x70] sm:$0x1]  ;;  %v765_v4 = vld [vmem:[%s2345_s28 + $0x6a] sm:$0x1] }
  0xfd   : > { %v1245_v12 = vmax.f32 %v1181_v19, %v3075_v34  ;;  %v3086_v0 = vpop.eup %1893  ;;  %v1094_v43 = vmax.f32 %v1049_v40, %v3066_v22  ;;  %1901 = vpow2.f32 %v3009_v41  ;;  %v1051_v59 = vmax.f32 %v987_v61, %v3078_v56  ;;  %v340_v61 = vld [vmem:[%s2352_s7 + $0x71] sm:$0x1] }
  0xfe   : > { %v1319_v45 = vmax.f32 %v1287_v23, %v1242_v32  ;;  %v3095_v20 = vmax.f32 %v988_v14, %v3081_v63  ;;  %v3100_v30 = vmax.f32 %v1182_v9, %v3086_v0  ;;  %1903 = vpow2.f32 %v3034_v18  ;;  %v341_v9 = vld [vmem:[%s2352_s7 + $0x72] sm:$0x1] }
  0xff   : > { %v989_v48 = vmax.f32 %v2840_v44, %v893_v29  ;;  %v990_v41 = vmax.f32 %v2844_v52, %v894_v10  ;;  %v591_v32 = vmul.f32 1.442695, %v337_v16  ;;  %v593_v37 = vmul.f32 1.442695, %v338_v26  ;;  %v355_v52 = vld [vmem:[%s2352_s7 + $0x80] sm:$0x1] }
 0x100   : > { %1905 = vrcp.f32 %v1319_v45  ;;  %v1288_v40 = vmax.f32 %v1245_v12, %v3100_v30  ;;  %v595_v14 = vmul.f32 1.442695, %v339_v58  ;;  %v3108_v18 = vmul.f32 %v3075_v34, %v765_v4  ;;  %v356_v10 = vld [vmem:[%s2352_s7 + $0x81] sm:$0x1]  ;;  %v752_v45 = vld [vmem:[%s2345_s28 + $0x5d] sm:$0x1] }
 0x101   : > { %v1896_v33 = vpop.eup %1895  ;;  %1907 = vpow2.f32 %v589_v11  ;;  %v3111_v44 = vmul.f32 %v3086_v0, %v766_v35  ;;  %v1126_v23 = vmax.f32 %v1094_v43, %v3038_v27  ;;  %v1095_v11 = vmax.f32 %v1051_v59, %v3095_v20  ;;  %v358_v4 = vld [vmem:[%s2352_s7 + $0x83] sm:$0x1] }
 0x102   : > { %v1368_v19 = vmul.f32 %v1896_v33, %v1125_v46  ;;  %1909 = vpow2.f32 %v559_v51  ;;  %v1320_v29 = vmax.f32 %v1288_v40, %v1244_v42  ;;  %v1053_v16 = vmax.f32 %v989_v48, %v3108_v18  ;;  %v751_v51 = vld [vmem:[%s2345_s28 + $0x5c] sm:$0x1]  ;;  %v342_v42 = vld [vmem:[%s2352_s7 + $0x73] sm:$0x1]  ;;  %v343_v33 = vld [vmem:[%s2352_s7 + $0x74] sm:$0x1] }
 0x103   : > { %1911 = vpow2.f32 %v561_v3  ;;  %v1898_v12 = vpop.eup %1897  ;;  %v3121_v46 = vmax.f32 %v990_v41, %v3111_v44  ;;  %v597_v27 = vmul.f32 1.442695, %v340_v61  ;;  %v627_v43 = vmul.f32 1.442695, %v355_v52  ;;  %v357_v3 = vld [vmem:[%s2352_s7 + $0x82] sm:$0x1] }
 0x104   : > { %1413 = vst [vmem:[%s2476_s8 + $0x12] sm:$0x1] %v1368_v19  ;;  %1913 = vpow2.f32 %v591_v32  ;;  %v1183_v58 = vmax.f32 %v2864_v5, %v1898_v12  ;;  %v629_v59 = vmul.f32 1.442695, %v356_v10  ;;  %v599_v35 = vmul.f32 1.442695, %v341_v9 }
 0x105   : > { %1915 = vrcp.f32 %v1320_v29  ;;  %v1900_v26 = vpop.eup %1899  ;;  %v1127_v41 = vmax.f32 %v1095_v11, %v3066_v22  ;;  %v895_v32 = vmul.f32 %v1898_v12, %v751_v51  ;;  %v344_v40 = vld [vmem:[%s2352_s7 + $0x75] sm:$0x1]  ;;  %v1096_v19 = vmax.f32 %v1053_v16, %v3121_v46  ;;  %v767_v29 = vld [vmem:[%s2345_s28 + $0x6c] sm:$0x1]  ;;  %v768_v10 = vld [vmem:[%s2345_s28 + $0x6d] sm:$0x1] }
 0x106   : > { %1917 = vpow2.f32 %v593_v37  ;;  %v1370_v48 = vmul.f32 %v1900_v26, %v1126_v23  ;;  %v601_v5 = vmul.f32 1.442695, %v342_v42  ;;  %v631_v37 = vmul.f32 1.442695, %v357_v3  ;;  %v753_v12 = vld [vmem:[%s2345_s28 + $0x5e] sm:$0x1] }
 0x107   : > { %1919 = vpow2.f32 %v595_v14  ;;  %v1902_v61 = vpop.eup %1901  ;;  %v633_v14 = vmul.f32 1.442695, %v358_v4  ;;  %v603_v16 = vmul.f32 1.442695, %v343_v33  ;;  %v3141_v51 = vmul.f32 1.442695, %v344_v40 }
 0x108   : > { %1921 = vpow2.f32 %v597_v27  ;;  %v3133_v52 = vpop.eup %1903  ;;  %1414 = vst [vmem:[%s2476_s8 + $0x13] sm:$0x1] %v1370_v48  ;;  %v896_v23 = vmul.f32 %v1902_v61, %v752_v45  ;;  %v1184_v22 = vmax.f32 %v2874_v47, %v1902_v61  ;;  %v991_v45 = vmax.f32 %v2877_v17, %v895_v32  ;;  %v754_v47 = vld [vmem:[%s2345_s28 + $0x5f] sm:$0x1]  ;;  %v360_v61 = vld [vmem:[%s2352_s7 + $0x85] sm:$0x1] }
 0x109   : > { %1923 = vpow2.f32 %v627_v43  ;;  %v1247_v9 = vmax.f32 %v1183_v58, %v3133_v52  ;;  %v359_v43 = vld [vmem:[%s2352_s7 + $0x84] sm:$0x1]  ;;  %v1128_v58 = vmax.f32 %v1096_v19, %v3095_v20 }
 0x10a   : > { %v1906_v11 = vpop.eup %1905  ;;  %1925 = vpow2.f32 %v629_v59  ;;  %v992_v3 = vmax.f32 %v2881_v21, %v896_v23  ;;  %v3151_v59 = vmul.f32 %v3133_v52, %v767_v29  ;;  %v769_v21 = vld [vmem:[%s2345_s28 + $0x6e] sm:$0x1]  ;;  %v3164_v19 = vmul.f32 1.442695, %v359_v43 }
 0x10b   : > { %v3143_v27 = vpop.eup %1907  ;;  %v1372_v42 = vmul.f32 %v1906_v11, %v1127_v41  ;;  %1927 = vpow2.f32 %v599_v35 }
 0x10c   : > { %v1910_v26 = vpop.eup %1909  ;;  %v1248_v4 = vmax.f32 %v1184_v22, %v3143_v27  ;;  %1929 = vpow2.f32 %v601_v5  ;;  %v3156_v17 = vmul.f32 %v3143_v27, %v768_v10  ;;  %v345_v5 = vld [vmem:[%s2352_s7 + $0x76] sm:$0x1]  ;;  %v1055_v10 = vmax.f32 %v991_v45, %v3151_v59  ;;  %v770_v22 = vld [vmem:[%s2345_s28 + $0x6f] sm:$0x1]  ;;  %v772_v45 = vld [vmem:[%s2345_s28 + $0x71] sm:$0x1] }
 0x10d   : > { %v1912_v48 = vpop.eup %1911  ;;  %1415 = vst [vmem:[%s2476_s8 + $0x14] sm:$0x1] %v1372_v42  ;;  %v897_v35 = vmul.f32 %v1910_v26, %v753_v12  ;;  %v1185_v41 = vmax.f32 %v2892_v1, %v1910_v26  ;;  %1931 = vpow2.f32 %v631_v37  ;;  %v771_v37 = vld [vmem:[%s2345_s28 + $0x70] sm:$0x1]  ;;  %v3184_v26 = vmul.f32 1.442695, %v345_v5 }
 0x10e   : > { %v3160_v20 = vpop.eup %1913  ;;  %v1289_v32 = vmax.f32 %v1247_v9, %v1248_v4  ;;  %v898_v33 = vmul.f32 %v1912_v48, %v754_v47  ;;  %v1186_v40 = vmax.f32 %v2896_v60, %v1912_v48  ;;  %v3169_v23 = vmax.f32 %v992_v3, %v3156_v17 }
 0x10f   : > { %v1916_v29 = vpop.eup %1915  ;;  %v1249_v1 = vmax.f32 %v1185_v41, %v3160_v20  ;;  %1933 = vpow2.f32 %v633_v14  ;;  %v993_v12 = vmax.f32 %v2910_v50, %v897_v35  ;;  %v3181_v47 = vmul.f32 %v3160_v20, %v769_v21  ;;  %v787_v50 = vld [vmem:[%s2345_s28 + $0x80] sm:$0x1]  ;;  %v346_v21 = vld [vmem:[%s2352_s7 + $0x77] sm:$0x1] }
 0x110   : > { %v3174_v11 = vpop.eup %1917  ;;  %v1374_v60 = vmul.f32 %v1916_v29, %v1128_v58  ;;  %v1321_v9 = vmax.f32 %v1289_v32, %v3100_v30  ;;  %v994_v42 = vmax.f32 %v2917_v55, %v898_v33  ;;  %v637_v14 = vmul.f32 1.442695, %v360_v61 }
 0x111   : > { %v1920_v3 = vpop.eup %1919  ;;  %v1250_v43 = vmax.f32 %v1186_v40, %v3174_v11  ;;  %v3188_v30 = vmul.f32 %v3174_v11, %v770_v22  ;;  %v773_v40 = vld [vmem:[%s2345_s28 + $0x72] sm:$0x1]  ;;  %v1097_v5 = vmax.f32 %v1055_v10, %v3169_v23  ;;  %v1057_v29 = vmax.f32 %v993_v12, %v3181_v47  ;;  %v789_v10 = vld [vmem:[%s2345_s28 + $0x82] sm:$0x1] }
 0x112   : > { %v1922_v48 = vpop.eup %1921  ;;  %1416 = vst [vmem:[%s2476_s8 + $0x15] sm:$0x1] %v1374_v60  ;;  %1935 = vrcp.f32 %v1321_v9  ;;  %v915_v55 = vmul.f32 %v1920_v3, %v771_v37  ;;  %v1187_v58 = vmax.f32 %v2913_v38, %v1920_v3  ;;  %v788_v60 = vld [vmem:[%s2345_s28 + $0x81] sm:$0x1]  ;;  %v774_v9 = vld [vmem:[%s2345_s28 + $0x73] sm:$0x1] }
 0x113   : > { %3378 = vst [vmem:[#allocation11_spill] sm:$0xff] %v3188_v30  ;;  %v1924_v35 = vpop.eup %1923  ;;  %v1290_v41 = vmax.f32 %v1249_v1, %v1250_v43  ;;  %v916_v32 = vmul.f32 %v1922_v48, %v772_v45  ;;  %v1188_v33 = vmax.f32 %v2921_v2, %v1922_v48  ;;  %1937 = vpow2.f32 %v603_v16 }
 0x114   : > { %v1926_v61 = vpop.eup %1925  ;;  %v1058_v22 = vmax.f32 %v994_v42, %v3188_v30  ;;  %v1251_v37 = vmax.f32 %v1187_v58, %v1924_v35  ;;  %v931_v1 = vmul.f32 %v1924_v35, %v787_v50  ;;  %1939 = vpow2.f32 %v3141_v51 }
 0x115   : > { %v1928_v38 = vpop.eup %1927  ;;  %v1322_v3 = vmax.f32 %v1290_v41, %v1248_v4  ;;  %v609_v2 = vmul.f32 1.442695, %v346_v21  ;;  %v995_v16 = vmax.f32 %v2939_v6, %v915_v55  ;;  %v1252_v43 = vmax.f32 %v1188_v33, %v1926_v61  ;;  %v790_v4 = vld [vmem:[%s2345_s28 + $0x83] sm:$0x1]  ;;  %v361_v55 = vld [vmem:[%s2352_s7 + $0x86] sm:$0x1] }
 0x116   : > { %v1930_v45 = vpop.eup %1929  ;;  %v917_v48 = vmul.f32 %v1928_v38, %v773_v40  ;;  %v1189_v12 = vmax.f32 %v2949_v36, %v1928_v38  ;;  %v932_v58 = vmul.f32 %v1926_v61, %v788_v60  ;;  %v996_v30 = vmax.f32 %v2942_v53, %v916_v32  ;;  %v362_v61 = vld [vmem:[%s2352_s7 + $0x87] sm:$0x1] }
 0x117   : > { %v1932_v42 = vpop.eup %1931  ;;  %1941 = vrcp.f32 %v1322_v3  ;;  %v918_v50 = vmul.f32 %v1930_v45, %v774_v9  ;;  %v1129_v51 = vmax.f32 %v1097_v5, %v3121_v46  ;;  %v1098_v21 = vmax.f32 %v1057_v29, %v1058_v22  ;;  %v347_v5 = vld [vmem:[%s2352_s7 + $0x78] sm:$0x1] }
 0x118   : > { %v1291_v35 = vmax.f32 %v1251_v37, %v1252_v43  ;;  %v1190_v6 = vmax.f32 %v2960_v49, %v1930_v45  ;;  %v933_v33 = vmul.f32 %v1932_v42, %v789_v10  ;;  %v997_v36 = vmax.f32 %v2977_v25, %v917_v48  ;;  %v775_v10 = vld [vmem:[%s2345_s28 + $0x74] sm:$0x1]  ;;  %v364_v48 = vld [vmem:[%s2352_s7 + $0x89] sm:$0x1] }
 0x119   : > { %v1934_v41 = vpop.eup %1933  ;;  %v1253_v40 = vmax.f32 %v1189_v12, %v1932_v42  ;;  %1943 = vpow2.f32 %v3164_v19  ;;  %v998_v60 = vmax.f32 %v2980_v31, %v918_v50  ;;  %v1059_v29 = vmax.f32 %v995_v16, %v931_v1  ;;  %v349_v12 = vld [vmem:[%s2352_s7 + $0x7a] sm:$0x1] }
 0x11a   : > { %v1323_v53 = vmax.f32 %v1291_v35, %v1251_v37  ;;  %v934_v32 = vmul.f32 %v1934_v41, %v790_v4  ;;  %v3213_v46 = vmax.f32 %v1190_v6, %v1934_v41  ;;  %v1060_v49 = vmax.f32 %v996_v30, %v932_v58  ;;  %v348_v37 = vld [vmem:[%s2352_s7 + $0x79] sm:$0x1]  ;;  %v363_v30 = vld [vmem:[%s2352_s7 + $0x88] sm:$0x1] }
 0x11b   : > { %1945 = vpow2.f32 %v637_v14  ;;  %v639_v22 = vmul.f32 1.442695, %v361_v55  ;;  %v641_v19 = vmul.f32 1.442695, %v362_v61  ;;  %v1130_v3 = vmax.f32 %v1098_v21, %v3169_v23  ;;  %v791_v61 = vld [vmem:[%s2345_s28 + $0x84] sm:$0x1] }
 0x11c   : > { %v1936_v9 = vpop.eup %1935  ;;  %1947 = vrcp.f32 %v1323_v53  ;;  %v1292_v25 = vmax.f32 %v1253_v40, %v3213_v46  ;;  %v611_v14 = vmul.f32 1.442695, %v347_v5  ;;  %v1061_v1 = vmax.f32 %v997_v36, %v933_v33  ;;  %v365_v33 = vld [vmem:[%s2352_s7 + $0x8a] sm:$0x1]  ;;  %v366_v36 = vld [vmem:[%s2352_s7 + $0x8b] sm:$0x1] }
 0x11d   : > { %v1938_v38 = vpop.eup %1937  ;;  %v1376_v31 = vmul.f32 %v1936_v9, %v1129_v51  ;;  %1949 = vpow2.f32 %v3184_v26  ;;  %v3221_v45 = vmax.f32 %v998_v60, %v934_v32  ;;  %v1099_v58 = vmax.f32 %v1059_v29, %v1060_v49  ;;  %v776_v26 = vld [vmem:[%s2345_s28 + $0x75] sm:$0x1]  ;;  %v350_v51 = vld [vmem:[%s2352_s7 + $0x7b] sm:$0x1]  ;;  %v792_v60 = vld [vmem:[%s2345_s28 + $0x85] sm:$0x1] }
 0x11e   : > { %v1324_v16 = vmax.f32 %v1292_v25, %v1252_v43  ;;  %1951 = vpow2.f32 %v609_v2  ;;  %v1940_v42 = vpop.eup %1939  ;;  %v613_v23 = vmul.f32 1.442695, %v348_v37  ;;  %v1191_v4 = vmax.f32 %v2998_v8, %v1938_v38 }
 0x11f   : > { %1417 = vst [vmem:[%s2476_s8 + $0x16] sm:$0x1] %v1376_v31  ;;  %1953 = vpow2.f32 %v639_v22  ;;  %v643_v50 = vmul.f32 1.442695, %v363_v30  ;;  %v919_v43 = vmul.f32 %v1938_v38, %v775_v10  ;;  %v645_v2 = vmul.f32 1.442695, %v364_v48 }
 0x120   : > { %1955 = vrcp.f32 %v1324_v16  ;;  %v615_v35 = vmul.f32 1.442695, %v349_v12  ;;  %v1100_v55 = vmax.f32 %v1061_v1, %v3221_v45  ;;  %v1192_v41 = vmax.f32 %v3003_v13, %v1940_v42  ;;  %v777_v31 = vld [vmem:[%s2345_s28 + $0x76] sm:$0x1]  ;;  %v778_v1 = vld [vmem:[%s2345_s28 + $0x77] sm:$0x1] }
 0x121   : > { %v1942_v21 = vpop.eup %1941  ;;  %1957 = vpow2.f32 %v641_v19  ;;  %v1131_v8 = vmax.f32 %v1099_v58, %v1059_v29  ;;  %v920_v53 = vmul.f32 %v1940_v42, %v776_v26  ;;  %v617_v32 = vmul.f32 1.442695, %v350_v51  ;;  %v351_v16 = vld [vmem:[%s2352_s7 + $0x7c] sm:$0x1]  ;;  %v793_v42 = vld [vmem:[%s2345_s28 + $0x86] sm:$0x1] }
 0x122   : > { %v1378_v6 = vmul.f32 %v1942_v21, %v1130_v3  ;;  %1959 = vpow2.f32 %v611_v14  ;;  %v999_v9 = vmax.f32 %v3017_v15, %v919_v43  ;;  %v647_v13 = vmul.f32 1.442695, %v365_v33  ;;  %v352_v26 = vld [vmem:[%s2352_s7 + $0x7d] sm:$0x1]  ;;  %v779_v43 = vld [vmem:[%s2345_s28 + $0x78] sm:$0x1] }
 0x123   : > { %v1944_v40 = vpop.eup %1943  ;;  %1961 = vpow2.f32 %v613_v23  ;;  %v649_v25 = vmul.f32 1.442695, %v366_v36  ;;  %v1132_v37 = vmax.f32 %v1100_v55, %v1060_v49  ;;  %v1000_v15 = vmax.f32 %v3023_v7, %v920_v53  ;;  %v367_v7 = vld [vmem:[%s2352_s7 + $0x8c] sm:$0x1]  ;;  %v794_v55 = vld [vmem:[%s2345_s28 + $0x87] sm:$0x1] }
 0x124   : > { %1418 = vst [vmem:[%s2476_s8 + $0x17] sm:$0x1] %v1378_v6  ;;  %v1255_v5 = vmax.f32 %v1191_v4, %v1944_v40  ;;  %1963 = vpow2.f32 %v643_v50  ;;  %v935_v29 = vmul.f32 %v1944_v40, %v791_v61  ;;  %v780_v33 = vld [vmem:[%s2345_s28 + $0x79] sm:$0x1]  ;;  %v621_v40 = vmul.f32 1.442695, %v352_v26 }
 0x125   : > { %v1946_v22 = vpop.eup %1945  ;;  %1965 = vpow2.f32 %v645_v2  ;;  %v619_v2 = vmul.f32 1.442695, %v351_v16 }
 0x126   : > { %v1948_v19 = vpop.eup %1947  ;;  %v3238_v38 = vmax.f32 %v1192_v41, %v1946_v22  ;;  %1967 = vpow2.f32 %v615_v35  ;;  %v936_v14 = vmul.f32 %v1946_v22, %v792_v60  ;;  %v1063_v50 = vmax.f32 %v999_v9, %v935_v29 }
 0x127   : > { %v1950_v3 = vpop.eup %1949  ;;  %v1380_v30 = vmul.f32 %v1948_v19, %v1131_v8  ;;  %1969 = vpow2.f32 %v617_v32  ;;  %v651_v8 = vmul.f32 1.442695, %v367_v7  ;;  %v795_v32 = vld [vmem:[%s2345_s28 + $0x88] sm:$0x1] }
 0x128   : > { %v1952_v10 = vpop.eup %1951  ;;  %v1293_v49 = vmax.f32 %v1255_v5, %v3238_v38  ;;  %v1193_v48 = vmax.f32 %v3020_v54, %v1950_v3  ;;  %v921_v58 = vmul.f32 %v1950_v3, %v777_v31  ;;  %1971 = vpow2.f32 %v647_v13 }
 0x129   : > { %v1954_v12 = vpop.eup %1953  ;;  %1419 = vst [vmem:[%s2476_s8 + $0x18] sm:$0x1] %v1380_v30  ;;  %v1194_v23 = vmax.f32 %v3028_v57, %v1952_v10  ;;  %v922_v21 = vmul.f32 %v1952_v10, %v778_v1  ;;  %v3253_v6 = vmax.f32 %v1000_v15, %v936_v14  ;;  %1973 = vpow2.f32 %v649_v25  ;;  %v796_v25 = vld [vmem:[%s2345_s28 + $0x89] sm:$0x1]  ;;  %v368_v30 = vld [vmem:[%s2352_s7 + $0x8d] sm:$0x1] }
 0x12a   : > { %v1956_v4 = vpop.eup %1955  ;;  %v1325_v51 = vmax.f32 %v1293_v49, %v3213_v46  ;;  %v1257_v41 = vmax.f32 %v1193_v48, %v1954_v12  ;;  %v937_v36 = vmul.f32 %v1954_v12, %v793_v42  ;;  %v1001_v61 = vmax.f32 %v3048_v39, %v921_v58  ;;  %v782_v48 = vld [vmem:[%s2345_s28 + $0x7b] sm:$0x1]  ;;  %v353_v42 = vld [vmem:[%s2352_s7 + $0x7e] sm:$0x1]  ;;  %v354_v58 = vld [vmem:[%s2352_s7 + $0x7f] sm:$0x1] }
 0x12b   : > { %v1958_v54 = vpop.eup %1957  ;;  %v1382_v35 = vmul.f32 %v1956_v4, %v1132_v37  ;;  %v1002_v13 = vmax.f32 %v3053_v28, %v922_v21  ;;  %v1101_v31 = vmax.f32 %v1063_v50, %v3253_v6  ;;  %v781_v28 = vld [vmem:[%s2345_s28 + $0x7a] sm:$0x1]  ;;  %v369_v21 = vld [vmem:[%s2352_s7 + $0x8e] sm:$0x1] }
 0x12c   : > { %v1960_v57 = vpop.eup %1959  ;;  %1975 = vrcp.f32 %v1325_v51  ;;  %v1258_v53 = vmax.f32 %v1194_v23, %v1958_v54  ;;  %v938_v9 = vmul.f32 %v1958_v54, %v794_v55  ;;  %v1065_v23 = vmax.f32 %v1001_v61, %v937_v36 }
 0x12d   : > { %v1962_v46 = vpop.eup %1961  ;;  %1420 = vst [vmem:[%s2476_s8 + $0x19] sm:$0x1] %v1382_v35  ;;  %v923_v60 = vmul.f32 %v1960_v57, %v779_v43  ;;  %v1195_v5 = vmax.f32 %v3050_v62, %v1960_v57  ;;  %1977 = vpow2.f32 %v619_v2  ;;  %v1133_v50 = vmax.f32 %v1101_v31, %v3221_v45  ;;  %v798_v57 = vld [vmem:[%s2345_s28 + $0x8b] sm:$0x1] }
 0x12e   : > { %v1964_v22 = vpop.eup %1963  ;;  %v924_v19 = vmul.f32 %v1962_v46, %v780_v33  ;;  %v1196_v37 = vmax.f32 %v3057_v24, %v1962_v46  ;;  %v1294_v3 = vmax.f32 %v1257_v41, %v1258_v53  ;;  %1979 = vpow2.f32 %v621_v40  ;;  %v797_v33 = vld [vmem:[%s2345_s28 + $0x8a] sm:$0x1] }
 0x12f   : > { %v1966_v29 = vpop.eup %1965  ;;  %v1259_v39 = vmax.f32 %v1195_v5, %v1964_v22  ;;  %v939_v14 = vmul.f32 %v1964_v22, %v795_v32  ;;  %v1003_v15 = vmax.f32 %v3078_v56, %v923_v60  ;;  %v1066_v26 = vmax.f32 %v1002_v13, %v938_v9 }
 0x130   : > { %v1968_v62 = vpop.eup %1967  ;;  %v1260_v1 = vmax.f32 %v1196_v37, %v1966_v29  ;;  %v1326_v24 = vmax.f32 %v1294_v3, %v3238_v38  ;;  %v940_v10 = vmul.f32 %v1966_v29, %v796_v25  ;;  %v1004_v49 = vmax.f32 %v3081_v63, %v924_v19  ;;  %v370_v63 = vld [vmem:[%s2352_s7 + $0x8f] sm:$0x1]  ;;  %v783_v37 = vld [vmem:[%s2345_s28 + $0x7c] sm:$0x1]  ;;  %v784_v3 = vld [vmem:[%s2345_s28 + $0x7d] sm:$0x1] }
 0x131   : > { %v1970_v16 = vpop.eup %1969  ;;  %v1197_v12 = vmax.f32 %v3075_v34, %v1968_v62  ;;  %v653_v56 = vmul.f32 1.442695, %v368_v30  ;;  %v925_v38 = vmul.f32 %v1968_v62, %v781_v28  ;;  %v623_v34 = vmul.f32 1.442695, %v353_v42  ;;  %v786_v42 = vld [vmem:[%s2345_s28 + $0x7f] sm:$0x1] }
 0x132   : > { %v1295_v7 = vmax.f32 %v1259_v39, %v1260_v1  ;;  %v1972_v4 = vpop.eup %1971  ;;  %1981 = vrcp.f32 %v1326_v24  ;;  %v1198_v51 = vmax.f32 %v3086_v0, %v1970_v16  ;;  %v926_v2 = vmul.f32 %v1970_v16, %v782_v48  ;;  %v785_v48 = vld [vmem:[%s2345_s28 + $0x7e] sm:$0x1] }
 0x133   : > { %v625_v54 = vmul.f32 1.442695, %v354_v58  ;;  %v1974_v35 = vpop.eup %1973  ;;  %v1067_v55 = vmax.f32 %v1003_v15, %v939_v14  ;;  %v1068_v41 = vmax.f32 %v1004_v49, %v940_v10  ;;  %v1261_v36 = vmax.f32 %v1197_v12, %v1972_v4  ;;  %v800_v10 = vld [vmem:[%s2345_s28 + $0x8d] sm:$0x1] }
 0x134   : > { %v1327_v43 = vmax.f32 %v1295_v7, %v1258_v53  ;;  %1983 = vpow2.f32 %v651_v8  ;;  %v1102_v45 = vmax.f32 %v1065_v23, %v1066_v26  ;;  %v655_v46 = vmul.f32 1.442695, %v369_v21 }
 0x135   : > { %v657_v61 = vmul.f32 1.442695, %v370_v63  ;;  %v1005_v32 = vmax.f32 %v3108_v18, %v925_v38  ;;  %v1262_v53 = vmax.f32 %v1198_v51, %v1974_v35  ;;  %v941_v60 = vmul.f32 %v1972_v4, %v797_v33 }
 0x136   : > { %v1976_v40 = vpop.eup %1975  ;;  %1985 = vrcp.f32 %v1327_v43  ;;  %v942_v5 = vmul.f32 %v1974_v35, %v798_v57  ;;  %v1006_v22 = vmax.f32 %v3111_v44, %v926_v2  ;;  %v1103_v8 = vmax.f32 %v1067_v55, %v1068_v41  ;;  %v801_v43 = vld [vmem:[%s2345_s28 + $0x8e] sm:$0x1]  ;;  %v802_v35 = vld [vmem:[%s2345_s28 + $0x8f] sm:$0x1] }
 0x137   : > { %v1384_v0 = vmul.f32 %v1976_v40, %v1133_v50  ;;  %1987 = vpow2.f32 %v653_v56  ;;  %v1978_v9 = vpop.eup %1977  ;;  %v1296_v13 = vmax.f32 %v1261_v36, %v1262_v53  ;;  %v1134_v19 = vmax.f32 %v1102_v45, %v3253_v6 }
 0x138   : > { %1989 = vpow2.f32 %v623_v34  ;;  %v1980_v25 = vpop.eup %1979  ;;  %v1069_v29 = vmax.f32 %v1005_v32, %v941_v60  ;;  %v1070_v31 = vmax.f32 %v1006_v22, %v942_v5  ;;  %v1199_v44 = vmax.f32 %v3133_v52, %v1978_v9 }
 0x139   : > { %1421 = vst [vmem:[%s2476_s8 + $0x1a] sm:$0x1] %v1384_v0  ;;  %1991 = vpow2.f32 %v625_v54  ;;  %v1328_v18 = vmax.f32 %v1296_v13, %v1260_v1  ;;  %v1135_v30 = vmax.f32 %v1103_v8, %v1066_v26  ;;  %v927_v14 = vmul.f32 %v1978_v9, %v783_v37  ;;  %v799_v1 = vld [vmem:[%s2345_s28 + $0x8c] sm:$0x1] }
 0x13a   : > { %1993 = vpow2.f32 %v655_v46  ;;  %v1200_v6 = vmax.f32 %v3143_v27, %v1980_v25  ;;  %v928_v28 = vmul.f32 %v1980_v25, %v784_v3  ;;  %v1104_v24 = vmax.f32 %v1069_v29, %v1070_v31  ;;  %v3379_v46 = vld [vmem:[#allocation11_spill] sm:$0xff] }
 0x13b   : > { %1995 = vpow2.f32 %v657_v61  ;;  %v1007_v26 = vmax.f32 %v3151_v59, %v927_v14 }
 0x13c   : > { %v1982_v39 = vpop.eup %1981  ;;  %1997 = vrcp.f32 %v1328_v18  ;;  %v1008_v4 = vmax.f32 %v3156_v17, %v928_v28  ;;  %v1136_v21 = vmax.f32 %v1104_v24, %v1068_v41 }
 0x13d   : > { %v1386_v62 = vmul.f32 %v1982_v39, %v1134_v19 }
 0x13e   : > { %v1984_v15 = vpop.eup %1983 }
 0x13f   : > { %1422 = vst [vmem:[%s2476_s8 + $0x1b] sm:$0x1] %v1386_v62  ;;  %v1263_v49 = vmax.f32 %v1199_v44, %v1984_v15  ;;  %v943_v23 = vmul.f32 %v1984_v15, %v799_v1 }
 0x140   : > { %v1986_v16 = vpop.eup %1985 }
 0x141   : > { %v1988_v12 = vpop.eup %1987  ;;  %v1388_v52 = vmul.f32 %v1986_v16, %v1135_v30  ;;  %v1071_v55 = vmax.f32 %v1007_v26, %v943_v23 }
 0x142   : > { %v1990_v58 = vpop.eup %1989  ;;  %v1264_v27 = vmax.f32 %v1200_v6, %v1988_v12  ;;  %v944_v56 = vmul.f32 %v1988_v12, %v800_v10 }
 0x143   : > { %v1992_v7 = vpop.eup %1991  ;;  %1423 = vst [vmem:[%s2476_s8 + $0x1c] sm:$0x1] %v1388_v52  ;;  %v929_v50 = vmul.f32 %v1990_v58, %v785_v48  ;;  %v1201_v38 = vmax.f32 %v3160_v20, %v1990_v58 }
 0x144   : > { %v1994_v51 = vpop.eup %1993  ;;  %v1297_v63 = vmax.f32 %v1263_v49, %v1264_v27  ;;  %v930_v2 = vmul.f32 %v1992_v7, %v786_v42  ;;  %v1202_v34 = vmax.f32 %v3174_v11, %v1992_v7  ;;  %v1072_v36 = vmax.f32 %v1008_v4, %v944_v56 }
 0x145   : > { %v1996_v54 = vpop.eup %1995  ;;  %v1265_v59 = vmax.f32 %v1201_v38, %v1994_v51  ;;  %v945_v40 = vmul.f32 %v1994_v51, %v801_v43  ;;  %v1009_v17 = vmax.f32 %v3181_v47, %v929_v50 }
 0x146   : > { %v1329_v33 = vmax.f32 %v1297_v63, %v1262_v53  ;;  %v1998_v57 = vpop.eup %1997  ;;  %v1266_v45 = vmax.f32 %v1202_v34, %v1996_v54  ;;  %v946_v41 = vmul.f32 %v1996_v54, %v802_v35  ;;  %v1010_v11 = vmax.f32 %v3379_v46, %v930_v2 }
 0x147   : > { %v1390_v20 = vmul.f32 %v1998_v57, %v1136_v21  ;;  %v1105_v0 = vmax.f32 %v1071_v55, %v1072_v36  ;;  %v1073_v53 = vmax.f32 %v1009_v17, %v945_v40 }
 0x148   : > { %1999 = vrcp.f32 %v1329_v33  ;;  %v1298_v61 = vmax.f32 %v1265_v59, %v1266_v45  ;;  %v1074_v60 = vmax.f32 %v1010_v11, %v946_v41 }
 0x149   : > { %1424 = vst [vmem:[%s2476_s8 + $0x1d] sm:$0x1] %v1390_v20  ;;  %v1137_v5 = vmax.f32 %v1105_v0, %v1070_v31 }
 0x14a   : > { %v1330_v32 = vmax.f32 %v1298_v61, %v1264_v27  ;;  %v1106_v47 = vmax.f32 %v1073_v53, %v1074_v60 }
 0x14c   : > { %2001 = vrcp.f32 %v1330_v32  ;;  %v1138_v8 = vmax.f32 %v1106_v47, %v1072_v36 }
 0x152   : > { %v2000_v22 = vpop.eup %1999 }
 0x153   : > { %v1392_v9 = vmul.f32 %v2000_v22, %v1137_v5 }
 0x155   : > { %1425 = vst [vmem:[%s2476_s8 + $0x1e] sm:$0x1] %v1392_v9 }
 0x156   : > { %v2002_v13 = vpop.eup %2001 }
 0x157   : > { %v1394_v25 = vmul.f32 %v2002_v13, %v1138_v8 }
 0x159   : > { %1426 = vst [vmem:[%s2476_s8 + $0x1f] sm:$0x1] %v1394_v25 }
 0x15a   : > { %2076 = shalt.err (!%p2073_p11)
}
 0x15b   : > { %s2077_s27 = scalar_lea.hbm %s3309_s4, 512  ;;  %s2081_s28 = scalar_lea.hbm %s3363_s2, 1024 }
 0x15c   : > { %p2078_p1 = scmp.ne.s32.totalorder %s3309_s4, %s2077_s27  ;;  %p2082_p4 = scmp.lt.u32.totalorder %s3309_s4, %s3363_s2 }
 0x15d   : > { %p2083_p6 = scmp.lt.u32.totalorder %s2081_s28, %s2077_s27  ;;  %p2085_p0 = scmp.lt.u32.totalorder %s2077_s27, %s3309_s4 }
 0x15e   : > { %p2079_p5 = pnand %p2078_p1, %p3380_p3 }
 0x15f   : > { %p2084_p8 = por %p2083_p6, %p2082_p4 }
 0x160   : > { %p2080_p2 = pneg %p2079_p5 }
 0x161   : > { %p2086_p12 = por %p2085_p0, %p2084_p8 }
 0x163   : > { %p2087_p13 = pnand %p2086_p12, %p2080_p2 }
 0x165   : > { %2090 = shalt.err (!%p2087_p13)
}
 0x166   : > { %s2156_s21 = smov 16   ;;  %s2157_s8 = smov 1  }
 0x167   : > { %1584 = dma.vmem_to_hbm [thread:$0]  (%p3380_p3), %s3311_s19, 512, %s3309_s4, %s1428_s15, %s2156_s21, %s2156_s21, %s2157_s8  }
 0x168 PF: > { %s1458_s18 = sand.u32 1, %s2129_s9   ;;  %p3381_p7 = scmp.ne.s32.totalorder %s3371_s24, 0 }
 0x169   : > { %p3382_p10 = scmp.ge.s32.totalorder %s2149_s14, 2  ;;  %s1459_s29 = scalar_lea.sflag [#allocation4], %s1458_s18 }
 0x16b   : > { %p1594_p9 = pnand %p3382_p10, %p3381_p7 }
 0x16d   : > { %2124 = dma.done.wait (!%p1594_p9), %s1459_s29, 512  }
 0x16e   : > { %2126 = vsyncadd (!%p1594_p9), %s1459_s29, 4294966784  ;;  %s21_s14 = sadd.s32 1, %s2149_s14   ;;  %s3383_s9 = smov %s2133_s10 }
 0x16f   : > { %p18_p11 = scmp.ge.s32.totalorder %s21_s14, 4   ;;  %s3384_s10 = smov %s2137_s11 }
 0x170   : > { %s3385_s11 = smov %s2229_s23  ;;  %s3386_s12 = smov %s2145_s13 }
 0x171   : > { %s3387_s13 = smov %s3389_s17  ;;  %20 = sbr.rel (!%p18_p11) target bundleno = 8 (0x8), region = 86 }
 0x178   :  { %1464 = vsyncpa [#allocation3], 1 }
 0x179   :  { %1466 = vsyncpa [#allocation3 + $0x1], 1 }
 0x17a   :  { %1467 = vsyncpa [#allocation6], 1 }
 0x17b   :  { %1469 = vsyncpa [#allocation6 + $0x1], 1 }
 0x17c   :  { %1470 = vsyncpa [#allocation4], 1 }
 0x17d   :  { %1472 = vsyncpa [#allocation4 + $0x1], 1 }

</bundles_post_ra>
